<compile_context>
chip_gen: v7x
topology: tpu7x:2x2x1
jax: 0.10.0
libtpu: 0.0.40
codegen_flags: <defaults>
</compile_context>

<pallas_src>
import math
import jax
import jax.numpy as jnp
from jax import lax
from jax.experimental import pallas as pl
from jax.experimental.pallas import tpu as pltpu


def _round_up(x, m):
    return ((x + m - 1) // m) * m


def _lstm_chunk_kernel(xproj_ref, whh_ref, wlin_ref, blin_ref, out_ref,
                       h_scr, c_scr, hall_scr):
    """One grid step = one chunk of TC time steps for one batch shard.

    xproj_ref : (TC*Bh, 4*Hp) f32  precomputed x@W_ih^T + b_ih + b_hh (time-major)
    whh_ref   : (Hp, 4*Hp)    mm   W_hh^T (gate-blocked, zero-padded)
    wlin_ref  : (Hp, Np)      mm   W_lin^T (zero-padded)
    blin_ref  : (1, Np)       f32  b_lin (zero-padded)
    out_ref   : (TC*Bh, nvar) f32  chunk outputs (only the real columns)
    h_scr     : (Bh, Hp)      mm   recurrent h   (persists across chunks)
    c_scr     : (Bh, Hp)      f32  recurrent c   (persists across chunks)
    hall_scr  : (TC*Bh, Hp)   mm   all hidden states of the chunk
    """
    chunk = pl.program_id(1)

    # torch.zeros init of (h, c) at the first time step of each batch shard.
    @pl.when(chunk == 0)
    def _():
        h_scr[...] = jnp.zeros_like(h_scr)
        c_scr[...] = jnp.zeros_like(c_scr)

    Bh, Hp = c_scr.shape
    TC = hall_scr.shape[0] // Bh
    mm_dtype = hall_scr.dtype
    nvar = out_ref.shape[1]

    def sigmoid(z):
        # 0.5*(1 + tanh(z/2)) == sigmoid(z): one EUP op instead of exp + recip.
        return 0.5 * (jnp.tanh(0.5 * z) + 1.0)

    # --- Recurrence: only h @ W_hh^T + elementwise per step. ---
    def step(t, carry):
        h, c = carry
        row = pl.multiple_of(t * Bh, 8)            # sublane-aligned dyn. slice
        # NOTE: W_hh is read from the VMEM ref inside the step on purpose —
        # a hoisted copy is register-file sized and spills every iteration.
        gates = xproj_ref[pl.ds(row, Bh), :] + jnp.dot(
            h, whh_ref[...], preferred_element_type=jnp.float32)   # (Bh, 4Hp)

        # Hp % 128 == 0 -> lane-aligned gate slices (pure VPU/EUP, no XLU).
        i_g = sigmoid(gates[:, 0 * Hp:1 * Hp])
        f_g = sigmoid(gates[:, 1 * Hp:2 * Hp])
        g_g = jnp.tanh(gates[:, 2 * Hp:3 * Hp])
        o_g = sigmoid(gates[:, 3 * Hp:4 * Hp])

        c_new = f_g * c + i_g * g_g
        h_new = (o_g * jnp.tanh(c_new)).astype(mm_dtype)

        hall_scr[pl.ds(row, Bh), :] = h_new
        return h_new, c_new

    # Unroll so the scheduler can overlap adjacent steps' non-serial work.
    unroll = True if TC <= 16 else 4
    h_fin, c_fin = lax.fori_loop(0, TC, step, (h_scr[...], c_scr[...]),
                                 unroll=unroll)
    h_scr[...] = h_fin
    c_scr[...] = c_fin

    # --- Epilogue: one batched output projection; store only real nvar cols
    # (no 128x-padded HBM writeback). ---
    proj = jnp.dot(hall_scr[...], wlin_ref[...],
                   preferred_element_type=jnp.float32) + blin_ref[...]
    out_ref[...] = proj[:, :nvar]


def rnn_predictor_forward(x, params, *, matmul_dtype=jnp.bfloat16):
    """x: (B, T, I) float32 -> (B, T, nvar) float32 (LSTM-cell RNNPredictor)."""
    B, T, I = x.shape
    w_ih, w_hh, b_ih, b_hh, w_lin, b_lin = (
        params["w_ih"], params["w_hh"], params["b_ih"], params["b_hh"],
        params["w_lin"], params["b_lin"])
    H = w_hh.shape[1]
    nvar = w_lin.shape[0]

    f32 = jnp.float32
    mm = jnp.dtype(matmul_dtype)
    mm_bytes = mm.itemsize

    # Padded sizes: lane-aligned hidden/gate/output blocks, sublane batch.
    Hp = _round_up(H, 128)
    Np = _round_up(nvar, 128)
    Bp = _round_up(B, 8)

    # Megacore/2-TC batch split (v7x). Size 1 when the batch is too small.
    n_split = 2 if (Bp >= 16 and Bp % 16 == 0) else 1
    Bh = Bp // n_split

    # --- Time-chunk length & VMEM limit derived from the actual footprint. ---
    try:
        vmem_cap = int(pltpu.get_tpu_info().vmem_capacity_bytes)
    except Exception:
        vmem_cap = 64 * 1024 * 1024           # conservative (v7x per-TC VMEM)

    # Resident bytes: double-buffered constant weight/bias blocks + h/c state.
    # TODO(synk): pipeline_mode=pl.Buffered(1) on the constant-index weight
    # specs would drop the 2x weight residency on v7x once W_hh gets large.
    resident = (2 * (Hp * 4 * Hp * mm_bytes + Hp * Np * mm_bytes + Np * 4)
                + Bh * Hp * (mm_bytes + 4))
    # Per-time-step bytes that scale with TC: double-buffered xproj input
    # block (f32), hall scratch, double-buffered output block.
    per_step = Bh * (2 * 4 * Hp * 4 + Hp * mm_bytes + 2 * nvar * 4)
    budget = max(per_step, int(0.4 * vmem_cap) - resident)
    TC = int(max(1, min(T, budget // per_step)))
    Tp = _round_up(T, TC)
    n_chunks = Tp // TC

    vmem_limit = int(min(vmem_cap,
                         max(resident + TC * per_step + 4 * 1024 * 1024,
                             32 * 1024 * 1024)))

    # --- Weight prep (XLA glue; exact per-gate zero padding: padded hidden
    # units provably stay 0 and contribute nothing to the output). ---
    wih4 = w_ih.reshape(4, H, I)
    wih_p = jnp.zeros((4, Hp, I), f32).at[:, :H, :].set(wih4)
    wih_t = jnp.transpose(wih_p, (2, 0, 1)).reshape(I, 4 * Hp)        # (I, 4Hp)

    whh4 = w_hh.reshape(4, H, H)
    whh_p = jnp.zeros((4, Hp, Hp), f32).at[:, :H, :H].set(whh4)
    whh_t = jnp.transpose(whh_p, (2, 0, 1)).reshape(Hp, 4 * Hp).astype(mm)

    b4 = (b_ih + b_hh).reshape(4, H)
    b_comb = jnp.zeros((4, Hp), f32).at[:, :H].set(b4).reshape(4 * Hp)

    wlin_t = jnp.zeros((Hp, Np), f32).at[:H, :nvar].set(w_lin.T).astype(mm)
    blin = jnp.zeros((1, Np), f32).at[:, :nvar].set(b_lin[None, :])

    # --- Input projection hoisted to XLA: one batched GEMM (f32). ---
    xT = jnp.transpose(x.astype(f32), (1, 0, 2))                      # (T,B,I)
    x_pad = jnp.zeros((Tp, Bp, I), f32).at[:T, :B, :].set(xT)
    xproj = jnp.einsum('tbi,ig->tbg', x_pad, wih_t,
                       precision=lax.Precision.HIGHEST) + b_comb      # (Tp,Bp,4Hp)
    xproj = (xproj.reshape(Tp, n_split, Bh, 4 * Hp)
                  .transpose(1, 0, 2, 3)
                  .reshape(n_split, Tp * Bh, 4 * Hp))

    grid_spec = pltpu.PrefetchScalarGridSpec(
        num_scalar_prefetch=0,
        grid=(n_split, n_chunks),
        in_specs=[
            pl.BlockSpec((None, TC * Bh, 4 * Hp), lambda s, c: (s, c, 0)),  # xproj
            pl.BlockSpec((Hp, 4 * Hp), lambda s, c: (0, 0)),                # W_hh^T
            pl.BlockSpec((Hp, Np), lambda s, c: (0, 0)),                    # W_lin^T
            pl.BlockSpec((1, Np), lambda s, c: (0, 0)),                     # b_lin
        ],
        out_specs=pl.BlockSpec((None, TC * Bh, nvar), lambda s, c: (s, c, 0)),
        scratch_shapes=[
            pltpu.VMEM((Bh, Hp), mm),            # h (persists across chunks)
            pltpu.VMEM((Bh, Hp), f32),           # c (persists across chunks)
            pltpu.VMEM((TC * Bh, Hp), mm),       # all h_t of the chunk
        ],
    )

    out_flat = pl.pallas_call(
        _lstm_chunk_kernel,
        out_shape=jax.ShapeDtypeStruct((n_split, Tp * Bh, nvar), f32),
        grid_spec=grid_spec,
        compiler_params=pltpu.CompilerParams(
            dimension_semantics=("parallel", "arbitrary"),
            vmem_limit_bytes=vmem_limit,
        ),
    )(xproj, whh_t, wlin_t, blin)

    # Un-pad and return batch-first (B, T, nvar).
    out = (out_flat.reshape(n_split, Tp, Bh, nvar)
                   .transpose(1, 0, 2, 3)
                   .reshape(Tp, Bp, nvar)[:T, :B, :])
    return jnp.transpose(out, (1, 0, 2))


def init_params(key, nvar, auxvar, hidden_size):
    """PyTorch-default-shaped init U(-1/sqrt(H), 1/sqrt(H))."""
    in_sz = nvar + auxvar
    H = hidden_size
    k = 1.0 / math.sqrt(H)
    keys = jax.random.split(key, 6)
    return {
        "w_ih": jax.random.uniform(keys[0], (4 * H, in_sz), jnp.float32, -k, k),
        "w_hh": jax.random.uniform(keys[1], (4 * H, H), jnp.float32, -k, k),
        "b_ih": jax.random.uniform(keys[2], (4 * H,), jnp.float32, -k, k),
        "b_hh": jax.random.uniform(keys[3], (4 * H,), jnp.float32, -k, k),
        "w_lin": jax.random.uniform(keys[4], (nvar, H), jnp.float32, -k, k),
        "b_lin": jax.random.uniform(keys[5], (nvar,), jnp.float32, -k, k),
    }


def _reference_forward(x, params):
    """Pure-JAX high-precision reference of the PyTorch forward."""
    B, T, I = x.shape
    H = params["w_hh"].shape[1]
    hp = lax.Precision.HIGHEST
    wih_t = params["w_ih"].T
    whh_t = params["w_hh"].T
    b = params["b_ih"] + params["b_hh"]
    wlin_t = params["w_lin"].T

    def step(carry, x_t):
        h, c = carry
        gates = (jnp.dot(x_t, wih_t, precision=hp)
                 + jnp.dot(h, whh_t, precision=hp) + b)
        i_g = jax.nn.sigmoid(gates[:, 0 * H:1 * H])
        f_g = jax.nn.sigmoid(gates[:, 1 * H:2 * H])
        g_g = jnp.tanh(gates[:, 2 * H:3 * H])
        o_g = jax.nn.sigmoid(gates[:, 3 * H:4 * H])
        c_new = f_g * c + i_g * g_g
        h_new = o_g * jnp.tanh(c_new)
        out = jnp.dot(h_new, wlin_t, precision=hp) + params["b_lin"]
        return (h_new, c_new), out

    init = (jnp.zeros((B, H), jnp.float32), jnp.zeros((B, H), jnp.float32))
    _, outs = jax.lax.scan(step, init, jnp.swapaxes(x, 0, 1))
    return jnp.swapaxes(outs, 0, 1)


if __name__ == "__main__":
    # Small shapes consistent with RNNPredictor(cell_type='lstm', nvar=1, auxvar=0).
    B, T, NVAR, AUXVAR, HIDDEN = 4, 8, 1, 0, 32

    key = jax.random.PRNGKey(0)
    k_x, k_p = jax.random.split(key)
    x = jax.random.normal(k_x, (B, T, NVAR + AUXVAR), dtype=jnp.float32)
    params = init_params(k_p, NVAR, AUXVAR, HIDDEN)

    ref = jax.block_until_ready(_reference_forward(x, params))

    # f32-matmul path (near-exact check).
    out_f32 = jax.block_until_ready(
        rnn_predictor_forward(x, params, matmul_dtype=jnp.float32))
    assert out_f32.shape == (B, T, NVAR)
    assert jnp.allclose(out_f32, ref, atol=1e-2, rtol=1e-2), "f32 path mismatch"

    # bf16-matmul path (MXU-native on v5e/v6e/v7x); looser tolerance.
    out_bf16 = jax.block_until_ready(
        rnn_predictor_forward(x, params, matmul_dtype=jnp.bfloat16))
    assert out_bf16.shape == (B, T, NVAR)
    assert jnp.allclose(out_bf16, ref, atol=5e-2, rtol=5e-2), "bf16 path mismatch"

    print("KERNEL_OK")
</pallas_src>

<mosaic_0001>
module attributes {stable_mosaic.version = 11 : i64} {
  func.func @_lstm_chunk_kernel(%arg0: i32, %arg1: i32, %arg2: memref<1x64x512xf32, #tpu.memory_space<vmem>>, %arg3: memref<128x512xf32, #tpu.memory_space<vmem>>, %arg4: memref<128x128xf32, #tpu.memory_space<vmem>>, %arg5: memref<1x128xf32, #tpu.memory_space<vmem>>, %arg6: memref<1x64x1xf32, #tpu.memory_space<vmem>>, %arg7: memref<8x128xf32, #tpu.memory_space<vmem>>, %arg8: memref<8x128xf32, #tpu.memory_space<vmem>>, %arg9: memref<64x128xf32, #tpu.memory_space<vmem>>) attributes {dimension_semantics = [#tpu.dimension_semantics<parallel>, #tpu.dimension_semantics<arbitrary>], iteration_bounds = array<i64: 1, 1>, scalar_prefetch = 0 : i64, scratch_operands = 3 : i64, tpu.core_type = #tpu.core_type<tc>, window_params = [{transform_indices = @transform_0, window_bounds = array<i64: 1, 64, 512>}, {pipeline_mode = #tpu.pipeline_mode<synchronous>, transform_indices = @transform_1, window_bounds = array<i64: 128, 512>}, {pipeline_mode = #tpu.pipeline_mode<synchronous>, transform_indices = @transform_2, window_bounds = array<i64: 128, 128>}, {pipeline_mode = #tpu.pipeline_mode<synchronous>, transform_indices = @transform_3, window_bounds = array<i64: 1, 128>}, {transform_indices = @transform_4, window_bounds = array<i64: 1, 64, 1>}]} {
    %c0_i32 = arith.constant 0 : i32
    %0 = arith.cmpi eq, %arg1, %c0_i32 : i32
    %1 = arith.extui %0 : i1 to i32
    %c0_i32_0 = arith.constant 0 : i32
    %2 = arith.cmpi ne, %1, %c0_i32_0 : i32
    scf.if %2 {
      %cst_146 = arith.constant 0.000000e+00 : f32
      %345 = vector.broadcast %cst_146 : f32 to vector<8x128xf32>
      %c0_147 = arith.constant 0 : index
      %c0_148 = arith.constant 0 : index
      %346 = vector.load %arg7[%c0_147, %c0_148] : memref<8x128xf32, #tpu.memory_space<vmem>>, vector<8x128xf32>
      tpu.vector_store %arg7[%c0_147, %c0_148], %345 {strides = array<i32>} : memref<8x128xf32, #tpu.memory_space<vmem>>, vector<8x128xf32>,
      %cst_149 = arith.constant 0.000000e+00 : f32
      %347 = vector.broadcast %cst_149 : f32 to vector<8x128xf32>
      %c0_150 = arith.constant 0 : index
      %c0_151 = arith.constant 0 : index
      %348 = vector.load %arg8[%c0_150, %c0_151] : memref<8x128xf32, #tpu.memory_space<vmem>>, vector<8x128xf32>
      tpu.vector_store %arg8[%c0_150, %c0_151], %347 {strides = array<i32>} : memref<8x128xf32, #tpu.memory_space<vmem>>, vector<8x128xf32>,
    } else {
    }
    %c0 = arith.constant 0 : index
    %c0_1 = arith.constant 0 : index
    %3 = vector.load %arg7[%c0, %c0_1] : memref<8x128xf32, #tpu.memory_space<vmem>>, vector<8x128xf32>
    %c0_2 = arith.constant 0 : index
    %c0_3 = arith.constant 0 : index
    %4 = vector.load %arg8[%c0_2, %c0_3] : memref<8x128xf32, #tpu.memory_space<vmem>>, vector<8x128xf32>
    %c0_i32_4 = arith.constant 0 : i32
    %c8_i32 = arith.constant 8 : i32
    %5 = arith.muli %c0_i32_4, %c8_i32 : i32
    %6 = tpu.assume_multiple %5, 8 : i32
    %c0_5 = arith.constant 0 : index
    %7 = arith.index_cast %6 : i32 to index
    %c0_6 = arith.constant 0 : index
    %8 = vector.load %arg2[%c0_5, %7, %c0_6] : memref<1x64x512xf32, #tpu.memory_space<vmem>>, vector<1x8x512xf32>
    %9 = vector.shape_cast %8 : vector<1x8x512xf32> to vector<8x512xf32>
    %c0_7 = arith.constant 0 : index
    %c0_8 = arith.constant 0 : index
    %10 = vector.load %arg3[%c0_7, %c0_8] : memref<128x512xf32, #tpu.memory_space<vmem>>, vector<128x512xf32>
    %cst = arith.constant dense<0.000000e+00> : vector<8x512xf32>
    %11 = tpu.matmul %3, %10, %cst {dimension_numbers = #tpu.dot_dimension_numbers<[1], [0], [0], [1], [0, 0, 1, 1], [], []>} : vector<8x128xf32>, vector<128x512xf32>, vector<8x512xf32> -> vector<8x512xf32>
    %12 = arith.addf %9, %11 : vector<8x512xf32>
    %13 = vector.extract_strided_slice %12 {offsets = [0, 0], sizes = [8, 128], strides = [1, 1]} : vector<8x512xf32> to vector<8x128xf32>
    %cst_9 = arith.constant 5.000000e-01 : f32
    %14 = vector.broadcast %cst_9 : f32 to vector<8x128xf32>
    %15 = arith.mulf %14, %13 : vector<8x128xf32>
    %16 = math.tanh %15 : vector<8x128xf32>
    %cst_10 = arith.constant 1.000000e+00 : f32
    %17 = vector.broadcast %cst_10 : f32 to vector<8x128xf32>
    %18 = arith.addf %16, %17 : vector<8x128xf32>
    %cst_11 = arith.constant 5.000000e-01 : f32
    %19 = vector.broadcast %cst_11 : f32 to vector<8x128xf32>
    %20 = arith.mulf %19, %18 : vector<8x128xf32>
    %21 = vector.extract_strided_slice %12 {offsets = [0, 128], sizes = [8, 128], strides = [1, 1]} : vector<8x512xf32> to vector<8x128xf32>
    %cst_12 = arith.constant 5.000000e-01 : f32
    %22 = vector.broadcast %cst_12 : f32 to vector<8x128xf32>
    %23 = arith.mulf %22, %21 : vector<8x128xf32>
    %24 = math.tanh %23 : vector<8x128xf32>
    %cst_13 = arith.constant 1.000000e+00 : f32
    %25 = vector.broadcast %cst_13 : f32 to vector<8x128xf32>
    %26 = arith.addf %24, %25 : vector<8x128xf32>
    %cst_14 = arith.constant 5.000000e-01 : f32
    %27 = vector.broadcast %cst_14 : f32 to vector<8x128xf32>
    %28 = arith.mulf %27, %26 : vector<8x128xf32>
    %29 = vector.extract_strided_slice %12 {offsets = [0, 256], sizes = [8, 128], strides = [1, 1]} : vector<8x512xf32> to vector<8x128xf32>
    %30 = math.tanh %29 : vector<8x128xf32>
    %31 = vector.extract_strided_slice %12 {offsets = [0, 384], sizes = [8, 128], strides = [1, 1]} : vector<8x512xf32> to vector<8x128xf32>
    %cst_15 = arith.constant 5.000000e-01 : f32
    %32 = vector.broadcast %cst_15 : f32 to vector<8x128xf32>
    %33 = arith.mulf %32, %31 : vector<8x128xf32>
    %34 = math.tanh %33 : vector<8x128xf32>
    %cst_16 = arith.constant 1.000000e+00 : f32
    %35 = vector.broadcast %cst_16 : f32 to vector<8x128xf32>
    %36 = arith.addf %34, %35 : vector<8x128xf32>
    %cst_17 = arith.constant 5.000000e-01 : f32
    %37 = vector.broadcast %cst_17 : f32 to vector<8x128xf32>
    %38 = arith.mulf %37, %36 : vector<8x128xf32>
    %39 = arith.mulf %28, %4 : vector<8x128xf32>
    %40 = arith.mulf %20, %30 : vector<8x128xf32>
    %41 = arith.addf %39, %40 : vector<8x128xf32>
    %42 = math.tanh %41 : vector<8x128xf32>
    %43 = arith.mulf %38, %42 : vector<8x128xf32>
    %44 = arith.index_cast %6 : i32 to index
    %c0_18 = arith.constant 0 : index
    %45 = vector.load %arg9[%44, %c0_18] : memref<64x128xf32, #tpu.memory_space<vmem>>, vector<8x128xf32>
    tpu.vector_store %arg9[%44, %c0_18], %43 {strides = array<i32>} : memref<64x128xf32, #tpu.memory_space<vmem>>, vector<8x128xf32>,
    %c1_i32 = arith.constant 1 : i32
    %c8_i32_19 = arith.constant 8 : i32
    %46 = arith.muli %c1_i32, %c8_i32_19 : i32
    %47 = tpu.assume_multiple %46, 8 : i32
    %c0_20 = arith.constant 0 : index
    %48 = arith.index_cast %47 : i32 to index
    %c0_21 = arith.constant 0 : index
    %49 = vector.load %arg2[%c0_20, %48, %c0_21] : memref<1x64x512xf32, #tpu.memory_space<vmem>>, vector<1x8x512xf32>
    %50 = vector.shape_cast %49 : vector<1x8x512xf32> to vector<8x512xf32>
    %c0_22 = arith.constant 0 : index
    %c0_23 = arith.constant 0 : index
    %51 = vector.load %arg3[%c0_22, %c0_23] : memref<128x512xf32, #tpu.memory_space<vmem>>, vector<128x512xf32>
    %cst_24 = arith.constant dense<0.000000e+00> : vector<8x512xf32>
    %52 = tpu.matmul %43, %51, %cst_24 {dimension_numbers = #tpu.dot_dimension_numbers<[1], [0], [0], [1], [0, 0, 1, 1], [], []>} : vector<8x128xf32>, vector<128x512xf32>, vector<8x512xf32> -> vector<8x512xf32>
    %53 = arith.addf %50, %52 : vector<8x512xf32>
    %54 = vector.extract_strided_slice %53 {offsets = [0, 0], sizes = [8, 128], strides = [1, 1]} : vector<8x512xf32> to vector<8x128xf32>
    %cst_25 = arith.constant 5.000000e-01 : f32
    %55 = vector.broadcast %cst_25 : f32 to vector<8x128xf32>
    %56 = arith.mulf %55, %54 : vector<8x128xf32>
    %57 = math.tanh %56 : vector<8x128xf32>
    %cst_26 = arith.constant 1.000000e+00 : f32
    %58 = vector.broadcast %cst_26 : f32 to vector<8x128xf32>
    %59 = arith.addf %57, %58 : vector<8x128xf32>
    %cst_27 = arith.constant 5.000000e-01 : f32
    %60 = vector.broadcast %cst_27 : f32 to vector<8x128xf32>
    %61 = arith.mulf %60, %59 : vector<8x128xf32>
    %62 = vector.extract_strided_slice %53 {offsets = [0, 128], sizes = [8, 128], strides = [1, 1]} : vector<8x512xf32> to vector<8x128xf32>
    %cst_28 = arith.constant 5.000000e-01 : f32
    %63 = vector.broadcast %cst_28 : f32 to vector<8x128xf32>
    %64 = arith.mulf %63, %62 : vector<8x128xf32>
    %65 = math.tanh %64 : vector<8x128xf32>
    %cst_29 = arith.constant 1.000000e+00 : f32
    %66 = vector.broadcast %cst_29 : f32 to vector<8x128xf32>
    %67 = arith.addf %65, %66 : vector<8x128xf32>
    %cst_30 = arith.constant 5.000000e-01 : f32
    %68 = vector.broadcast %cst_30 : f32 to vector<8x128xf32>
    %69 = arith.mulf %68, %67 : vector<8x128xf32>
    %70 = vector.extract_strided_slice %53 {offsets = [0, 256], sizes = [8, 128], strides = [1, 1]} : vector<8x512xf32> to vector<8x128xf32>
    %71 = math.tanh %70 : vector<8x128xf32>
    %72 = vector.extract_strided_slice %53 {offsets = [0, 384], sizes = [8, 128], strides = [1, 1]} : vector<8x512xf32> to vector<8x128xf32>
    %cst_31 = arith.constant 5.000000e-01 : f32
    %73 = vector.broadcast %cst_31 : f32 to vector<8x128xf32>
    %74 = arith.mulf %73, %72 : vector<8x128xf32>
    %75 = math.tanh %74 : vector<8x128xf32>
    %cst_32 = arith.constant 1.000000e+00 : f32
    %76 = vector.broadcast %cst_32 : f32 to vector<8x128xf32>
    %77 = arith.addf %75, %76 : vector<8x128xf32>
    %cst_33 = arith.constant 5.000000e-01 : f32
    %78 = vector.broadcast %cst_33 : f32 to vector<8x128xf32>
    %79 = arith.mulf %78, %77 : vector<8x128xf32>
    %80 = arith.mulf %69, %41 : vector<8x128xf32>
    %81 = arith.mulf %61, %71 : vector<8x128xf32>
    %82 = arith.addf %80, %81 : vector<8x128xf32>
    %83 = math.tanh %82 : vector<8x128xf32>
    %84 = arith.mulf %79, %83 : vector<8x128xf32>
    %85 = arith.index_cast %47 : i32 to index
    %c0_34 = arith.constant 0 : index
    %86 = vector.load %arg9[%85, %c0_34] : memref<64x128xf32, #tpu.memory_space<vmem>>, vector<8x128xf32>
    tpu.vector_store %arg9[%85, %c0_34], %84 {strides = array<i32>} : memref<64x128xf32, #tpu.memory_space<vmem>>, vector<8x128xf32>,
    %c2_i32 = arith.constant 2 : i32
    %c8_i32_35 = arith.constant 8 : i32
    %87 = arith.muli %c2_i32, %c8_i32_35 : i32
    %88 = tpu.assume_multiple %87, 8 : i32
    %c0_36 = arith.constant 0 : index
    %89 = arith.index_cast %88 : i32 to index
    %c0_37 = arith.constant 0 : index
    %90 = vector.load %arg2[%c0_36, %89, %c0_37] : memref<1x64x512xf32, #tpu.memory_space<vmem>>, vector<1x8x512xf32>
    %91 = vector.shape_cast %90 : vector<1x8x512xf32> to vector<8x512xf32>
    %c0_38 = arith.constant 0 : index
    %c0_39 = arith.constant 0 : index
    %92 = vector.load %arg3[%c0_38, %c0_39] : memref<128x512xf32, #tpu.memory_space<vmem>>, vector<128x512xf32>
    %cst_40 = arith.constant dense<0.000000e+00> : vector<8x512xf32>
    %93 = tpu.matmul %84, %92, %cst_40 {dimension_numbers = #tpu.dot_dimension_numbers<[1], [0], [0], [1], [0, 0, 1, 1], [], []>} : vector<8x128xf32>, vector<128x512xf32>, vector<8x512xf32> -> vector<8x512xf32>
    %94 = arith.addf %91, %93 : vector<8x512xf32>
    %95 = vector.extract_strided_slice %94 {offsets = [0, 0], sizes = [8, 128], strides = [1, 1]} : vector<8x512xf32> to vector<8x128xf32>
    %cst_41 = arith.constant 5.000000e-01 : f32
    %96 = vector.broadcast %cst_41 : f32 to vector<8x128xf32>
    %97 = arith.mulf %96, %95 : vector<8x128xf32>
    %98 = math.tanh %97 : vector<8x128xf32>
    %cst_42 = arith.constant 1.000000e+00 : f32
    %99 = vector.broadcast %cst_42 : f32 to vector<8x128xf32>
    %100 = arith.addf %98, %99 : vector<8x128xf32>
    %cst_43 = arith.constant 5.000000e-01 : f32
    %101 = vector.broadcast %cst_43 : f32 to vector<8x128xf32>
    %102 = arith.mulf %101, %100 : vector<8x128xf32>
    %103 = vector.extract_strided_slice %94 {offsets = [0, 128], sizes = [8, 128], strides = [1, 1]} : vector<8x512xf32> to vector<8x128xf32>
    %cst_44 = arith.constant 5.000000e-01 : f32
    %104 = vector.broadcast %cst_44 : f32 to vector<8x128xf32>
    %105 = arith.mulf %104, %103 : vector<8x128xf32>
    %106 = math.tanh %105 : vector<8x128xf32>
    %cst_45 = arith.constant 1.000000e+00 : f32
    %107 = vector.broadcast %cst_45 : f32 to vector<8x128xf32>
    %108 = arith.addf %106, %107 : vector<8x128xf32>
    %cst_46 = arith.constant 5.000000e-01 : f32
    %109 = vector.broadcast %cst_46 : f32 to vector<8x128xf32>
    %110 = arith.mulf %109, %108 : vector<8x128xf32>
    %111 = vector.extract_strided_slice %94 {offsets = [0, 256], sizes = [8, 128], strides = [1, 1]} : vector<8x512xf32> to vector<8x128xf32>
    %112 = math.tanh %111 : vector<8x128xf32>
    %113 = vector.extract_strided_slice %94 {offsets = [0, 384], sizes = [8, 128], strides = [1, 1]} : vector<8x512xf32> to vector<8x128xf32>
    %cst_47 = arith.constant 5.000000e-01 : f32
    %114 = vector.broadcast %cst_47 : f32 to vector<8x128xf32>
    %115 = arith.mulf %114, %113 : vector<8x128xf32>
    %116 = math.tanh %115 : vector<8x128xf32>
    %cst_48 = arith.constant 1.000000e+00 : f32
    %117 = vector.broadcast %cst_48 : f32 to vector<8x128xf32>
    %118 = arith.addf %116, %117 : vector<8x128xf32>
    %cst_49 = arith.constant 5.000000e-01 : f32
    %119 = vector.broadcast %cst_49 : f32 to vector<8x128xf32>
    %120 = arith.mulf %119, %118 : vector<8x128xf32>
    %121 = arith.mulf %110, %82 : vector<8x128xf32>
    %122 = arith.mulf %102, %112 : vector<8x128xf32>
    %123 = arith.addf %121, %122 : vector<8x128xf32>
    %124 = math.tanh %123 : vector<8x128xf32>
    %125 = arith.mulf %120, %124 : vector<8x128xf32>
    %126 = arith.index_cast %88 : i32 to index
    %c0_50 = arith.constant 0 : index
    %127 = vector.load %arg9[%126, %c0_50] : memref<64x128xf32, #tpu.memory_space<vmem>>, vector<8x128xf32>
    tpu.vector_store %arg9[%126, %c0_50], %125 {strides = array<i32>} : memref<64x128xf32, #tpu.memory_space<vmem>>, vector<8x128xf32>,
    %c3_i32 = arith.constant 3 : i32
    %c8_i32_51 = arith.constant 8 : i32
    %128 = arith.muli %c3_i32, %c8_i32_51 : i32
    %129 = tpu.assume_multiple %128, 8 : i32
    %c0_52 = arith.constant 0 : index
    %130 = arith.index_cast %129 : i32 to index
    %c0_53 = arith.constant 0 : index
    %131 = vector.load %arg2[%c0_52, %130, %c0_53] : memref<1x64x512xf32, #tpu.memory_space<vmem>>, vector<1x8x512xf32>
    %132 = vector.shape_cast %131 : vector<1x8x512xf32> to vector<8x512xf32>
    %c0_54 = arith.constant 0 : index
    %c0_55 = arith.constant 0 : index
    %133 = vector.load %arg3[%c0_54, %c0_55] : memref<128x512xf32, #tpu.memory_space<vmem>>, vector<128x512xf32>
    %cst_56 = arith.constant dense<0.000000e+00> : vector<8x512xf32>
    %134 = tpu.matmul %125, %133, %cst_56 {dimension_numbers = #tpu.dot_dimension_numbers<[1], [0], [0], [1], [0, 0, 1, 1], [], []>} : vector<8x128xf32>, vector<128x512xf32>, vector<8x512xf32> -> vector<8x512xf32>
    %135 = arith.addf %132, %134 : vector<8x512xf32>
    %136 = vector.extract_strided_slice %135 {offsets = [0, 0], sizes = [8, 128], strides = [1, 1]} : vector<8x512xf32> to vector<8x128xf32>
    %cst_57 = arith.constant 5.000000e-01 : f32
    %137 = vector.broadcast %cst_57 : f32 to vector<8x128xf32>
    %138 = arith.mulf %137, %136 : vector<8x128xf32>
    %139 = math.tanh %138 : vector<8x128xf32>
    %cst_58 = arith.constant 1.000000e+00 : f32
    %140 = vector.broadcast %cst_58 : f32 to vector<8x128xf32>
    %141 = arith.addf %139, %140 : vector<8x128xf32>
    %cst_59 = arith.constant 5.000000e-01 : f32
    %142 = vector.broadcast %cst_59 : f32 to vector<8x128xf32>
    %143 = arith.mulf %142, %141 : vector<8x128xf32>
    %144 = vector.extract_strided_slice %135 {offsets = [0, 128], sizes = [8, 128], strides = [1, 1]} : vector<8x512xf32> to vector<8x128xf32>
    %cst_60 = arith.constant 5.000000e-01 : f32
    %145 = vector.broadcast %cst_60 : f32 to vector<8x128xf32>
    %146 = arith.mulf %145, %144 : vector<8x128xf32>
    %147 = math.tanh %146 : vector<8x128xf32>
    %cst_61 = arith.constant 1.000000e+00 : f32
    %148 = vector.broadcast %cst_61 : f32 to vector<8x128xf32>
    %149 = arith.addf %147, %148 : vector<8x128xf32>
    %cst_62 = arith.constant 5.000000e-01 : f32
    %150 = vector.broadcast %cst_62 : f32 to vector<8x128xf32>
    %151 = arith.mulf %150, %149 : vector<8x128xf32>
    %152 = vector.extract_strided_slice %135 {offsets = [0, 256], sizes = [8, 128], strides = [1, 1]} : vector<8x512xf32> to vector<8x128xf32>
    %153 = math.tanh %152 : vector<8x128xf32>
    %154 = vector.extract_strided_slice %135 {offsets = [0, 384], sizes = [8, 128], strides = [1, 1]} : vector<8x512xf32> to vector<8x128xf32>
    %cst_63 = arith.constant 5.000000e-01 : f32
    %155 = vector.broadcast %cst_63 : f32 to vector<8x128xf32>
    %156 = arith.mulf %155, %154 : vector<8x128xf32>
    %157 = math.tanh %156 : vector<8x128xf32>
    %cst_64 = arith.constant 1.000000e+00 : f32
    %158 = vector.broadcast %cst_64 : f32 to vector<8x128xf32>
    %159 = arith.addf %157, %158 : vector<8x128xf32>
    %cst_65 = arith.constant 5.000000e-01 : f32
    %160 = vector.broadcast %cst_65 : f32 to vector<8x128xf32>
    %161 = arith.mulf %160, %159 : vector<8x128xf32>
    %162 = arith.mulf %151, %123 : vector<8x128xf32>
    %163 = arith.mulf %143, %153 : vector<8x128xf32>
    %164 = arith.addf %162, %163 : vector<8x128xf32>
    %165 = math.tanh %164 : vector<8x128xf32>
    %166 = arith.mulf %161, %165 : vector<8x128xf32>
    %167 = arith.index_cast %129 : i32 to index
    %c0_66 = arith.constant 0 : index
    %168 = vector.load %arg9[%167, %c0_66] : memref<64x128xf32, #tpu.memory_space<vmem>>, vector<8x128xf32>
    tpu.vector_store %arg9[%167, %c0_66], %166 {strides = array<i32>} : memref<64x128xf32, #tpu.memory_space<vmem>>, vector<8x128xf32>,
    %c4_i32 = arith.constant 4 : i32
    %c8_i32_67 = arith.constant 8 : i32
    %169 = arith.muli %c4_i32, %c8_i32_67 : i32
    %170 = tpu.assume_multiple %169, 8 : i32
    %c0_68 = arith.constant 0 : index
    %171 = arith.index_cast %170 : i32 to index
    %c0_69 = arith.constant 0 : index
    %172 = vector.load %arg2[%c0_68, %171, %c0_69] : memref<1x64x512xf32, #tpu.memory_space<vmem>>, vector<1x8x512xf32>
    %173 = vector.shape_cast %172 : vector<1x8x512xf32> to vector<8x512xf32>
    %c0_70 = arith.constant 0 : index
    %c0_71 = arith.constant 0 : index
    %174 = vector.load %arg3[%c0_70, %c0_71] : memref<128x512xf32, #tpu.memory_space<vmem>>, vector<128x512xf32>
    %cst_72 = arith.constant dense<0.000000e+00> : vector<8x512xf32>
    %175 = tpu.matmul %166, %174, %cst_72 {dimension_numbers = #tpu.dot_dimension_numbers<[1], [0], [0], [1], [0, 0, 1, 1], [], []>} : vector<8x128xf32>, vector<128x512xf32>, vector<8x512xf32> -> vector<8x512xf32>
    %176 = arith.addf %173, %175 : vector<8x512xf32>
    %177 = vector.extract_strided_slice %176 {offsets = [0, 0], sizes = [8, 128], strides = [1, 1]} : vector<8x512xf32> to vector<8x128xf32>
    %cst_73 = arith.constant 5.000000e-01 : f32
    %178 = vector.broadcast %cst_73 : f32 to vector<8x128xf32>
    %179 = arith.mulf %178, %177 : vector<8x128xf32>
    %180 = math.tanh %179 : vector<8x128xf32>
    %cst_74 = arith.constant 1.000000e+00 : f32
    %181 = vector.broadcast %cst_74 : f32 to vector<8x128xf32>
    %182 = arith.addf %180, %181 : vector<8x128xf32>
    %cst_75 = arith.constant 5.000000e-01 : f32
    %183 = vector.broadcast %cst_75 : f32 to vector<8x128xf32>
    %184 = arith.mulf %183, %182 : vector<8x128xf32>
    %185 = vector.extract_strided_slice %176 {offsets = [0, 128], sizes = [8, 128], strides = [1, 1]} : vector<8x512xf32> to vector<8x128xf32>
    %cst_76 = arith.constant 5.000000e-01 : f32
    %186 = vector.broadcast %cst_76 : f32 to vector<8x128xf32>
    %187 = arith.mulf %186, %185 : vector<8x128xf32>
    %188 = math.tanh %187 : vector<8x128xf32>
    %cst_77 = arith.constant 1.000000e+00 : f32
    %189 = vector.broadcast %cst_77 : f32 to vector<8x128xf32>
    %190 = arith.addf %188, %189 : vector<8x128xf32>
    %cst_78 = arith.constant 5.000000e-01 : f32
    %191 = vector.broadcast %cst_78 : f32 to vector<8x128xf32>
    %192 = arith.mulf %191, %190 : vector<8x128xf32>
    %193 = vector.extract_strided_slice %176 {offsets = [0, 256], sizes = [8, 128], strides = [1, 1]} : vector<8x512xf32> to vector<8x128xf32>
    %194 = math.tanh %193 : vector<8x128xf32>
    %195 = vector.extract_strided_slice %176 {offsets = [0, 384], sizes = [8, 128], strides = [1, 1]} : vector<8x512xf32> to vector<8x128xf32>
    %cst_79 = arith.constant 5.000000e-01 : f32
    %196 = vector.broadcast %cst_79 : f32 to vector<8x128xf32>
    %197 = arith.mulf %196, %195 : vector<8x128xf32>
    %198 = math.tanh %197 : vector<8x128xf32>
    %cst_80 = arith.constant 1.000000e+00 : f32
    %199 = vector.broadcast %cst_80 : f32 to vector<8x128xf32>
    %200 = arith.addf %198, %199 : vector<8x128xf32>
    %cst_81 = arith.constant 5.000000e-01 : f32
    %201 = vector.broadcast %cst_81 : f32 to vector<8x128xf32>
    %202 = arith.mulf %201, %200 : vector<8x128xf32>
    %203 = arith.mulf %192, %164 : vector<8x128xf32>
    %204 = arith.mulf %184, %194 : vector<8x128xf32>
    %205 = arith.addf %203, %204 : vector<8x128xf32>
    %206 = math.tanh %205 : vector<8x128xf32>
    %207 = arith.mulf %202, %206 : vector<8x128xf32>
    %208 = arith.index_cast %170 : i32 to index
    %c0_82 = arith.constant 0 : index
    %209 = vector.load %arg9[%208, %c0_82] : memref<64x128xf32, #tpu.memory_space<vmem>>, vector<8x128xf32>
    tpu.vector_store %arg9[%208, %c0_82], %207 {strides = array<i32>} : memref<64x128xf32, #tpu.memory_space<vmem>>, vector<8x128xf32>,
    %c5_i32 = arith.constant 5 : i32
    %c8_i32_83 = arith.constant 8 : i32
    %210 = arith.muli %c5_i32, %c8_i32_83 : i32
    %211 = tpu.assume_multiple %210, 8 : i32
    %c0_84 = arith.constant 0 : index
    %212 = arith.index_cast %211 : i32 to index
    %c0_85 = arith.constant 0 : index
    %213 = vector.load %arg2[%c0_84, %212, %c0_85] : memref<1x64x512xf32, #tpu.memory_space<vmem>>, vector<1x8x512xf32>
    %214 = vector.shape_cast %213 : vector<1x8x512xf32> to vector<8x512xf32>
    %c0_86 = arith.constant 0 : index
    %c0_87 = arith.constant 0 : index
    %215 = vector.load %arg3[%c0_86, %c0_87] : memref<128x512xf32, #tpu.memory_space<vmem>>, vector<128x512xf32>
    %cst_88 = arith.constant dense<0.000000e+00> : vector<8x512xf32>
    %216 = tpu.matmul %207, %215, %cst_88 {dimension_numbers = #tpu.dot_dimension_numbers<[1], [0], [0], [1], [0, 0, 1, 1], [], []>} : vector<8x128xf32>, vector<128x512xf32>, vector<8x512xf32> -> vector<8x512xf32>
    %217 = arith.addf %214, %216 : vector<8x512xf32>
    %218 = vector.extract_strided_slice %217 {offsets = [0, 0], sizes = [8, 128], strides = [1, 1]} : vector<8x512xf32> to vector<8x128xf32>
    %cst_89 = arith.constant 5.000000e-01 : f32
    %219 = vector.broadcast %cst_89 : f32 to vector<8x128xf32>
    %220 = arith.mulf %219, %218 : vector<8x128xf32>
    %221 = math.tanh %220 : vector<8x128xf32>
    %cst_90 = arith.constant 1.000000e+00 : f32
    %222 = vector.broadcast %cst_90 : f32 to vector<8x128xf32>
    %223 = arith.addf %221, %222 : vector<8x128xf32>
    %cst_91 = arith.constant 5.000000e-01 : f32
    %224 = vector.broadcast %cst_91 : f32 to vector<8x128xf32>
    %225 = arith.mulf %224, %223 : vector<8x128xf32>
    %226 = vector.extract_strided_slice %217 {offsets = [0, 128], sizes = [8, 128], strides = [1, 1]} : vector<8x512xf32> to vector<8x128xf32>
    %cst_92 = arith.constant 5.000000e-01 : f32
    %227 = vector.broadcast %cst_92 : f32 to vector<8x128xf32>
    %228 = arith.mulf %227, %226 : vector<8x128xf32>
    %229 = math.tanh %228 : vector<8x128xf32>
    %cst_93 = arith.constant 1.000000e+00 : f32
    %230 = vector.broadcast %cst_93 : f32 to vector<8x128xf32>
    %231 = arith.addf %229, %230 : vector<8x128xf32>
    %cst_94 = arith.constant 5.000000e-01 : f32
    %232 = vector.broadcast %cst_94 : f32 to vector<8x128xf32>
    %233 = arith.mulf %232, %231 : vector<8x128xf32>
    %234 = vector.extract_strided_slice %217 {offsets = [0, 256], sizes = [8, 128], strides = [1, 1]} : vector<8x512xf32> to vector<8x128xf32>
    %235 = math.tanh %234 : vector<8x128xf32>
    %236 = vector.extract_strided_slice %217 {offsets = [0, 384], sizes = [8, 128], strides = [1, 1]} : vector<8x512xf32> to vector<8x128xf32>
    %cst_95 = arith.constant 5.000000e-01 : f32
    %237 = vector.broadcast %cst_95 : f32 to vector<8x128xf32>
    %238 = arith.mulf %237, %236 : vector<8x128xf32>
    %239 = math.tanh %238 : vector<8x128xf32>
    %cst_96 = arith.constant 1.000000e+00 : f32
    %240 = vector.broadcast %cst_96 : f32 to vector<8x128xf32>
    %241 = arith.addf %239, %240 : vector<8x128xf32>
    %cst_97 = arith.constant 5.000000e-01 : f32
    %242 = vector.broadcast %cst_97 : f32 to vector<8x128xf32>
    %243 = arith.mulf %242, %241 : vector<8x128xf32>
    %244 = arith.mulf %233, %205 : vector<8x128xf32>
    %245 = arith.mulf %225, %235 : vector<8x128xf32>
    %246 = arith.addf %244, %245 : vector<8x128xf32>
    %247 = math.tanh %246 : vector<8x128xf32>
    %248 = arith.mulf %243, %247 : vector<8x128xf32>
    %249 = arith.index_cast %211 : i32 to index
    %c0_98 = arith.constant 0 : index
    %250 = vector.load %arg9[%249, %c0_98] : memref<64x128xf32, #tpu.memory_space<vmem>>, vector<8x128xf32>
    tpu.vector_store %arg9[%249, %c0_98], %248 {strides = array<i32>} : memref<64x128xf32, #tpu.memory_space<vmem>>, vector<8x128xf32>,
    %c6_i32 = arith.constant 6 : i32
    %c8_i32_99 = arith.constant 8 : i32
    %251 = arith.muli %c6_i32, %c8_i32_99 : i32
    %252 = tpu.assume_multiple %251, 8 : i32
    %c0_100 = arith.constant 0 : index
    %253 = arith.index_cast %252 : i32 to index
    %c0_101 = arith.constant 0 : index
    %254 = vector.load %arg2[%c0_100, %253, %c0_101] : memref<1x64x512xf32, #tpu.memory_space<vmem>>, vector<1x8x512xf32>
    %255 = vector.shape_cast %254 : vector<1x8x512xf32> to vector<8x512xf32>
    %c0_102 = arith.constant 0 : index
    %c0_103 = arith.constant 0 : index
    %256 = vector.load %arg3[%c0_102, %c0_103] : memref<128x512xf32, #tpu.memory_space<vmem>>, vector<128x512xf32>
    %cst_104 = arith.constant dense<0.000000e+00> : vector<8x512xf32>
    %257 = tpu.matmul %248, %256, %cst_104 {dimension_numbers = #tpu.dot_dimension_numbers<[1], [0], [0], [1], [0, 0, 1, 1], [], []>} : vector<8x128xf32>, vector<128x512xf32>, vector<8x512xf32> -> vector<8x512xf32>
    %258 = arith.addf %255, %257 : vector<8x512xf32>
    %259 = vector.extract_strided_slice %258 {offsets = [0, 0], sizes = [8, 128], strides = [1, 1]} : vector<8x512xf32> to vector<8x128xf32>
    %cst_105 = arith.constant 5.000000e-01 : f32
    %260 = vector.broadcast %cst_105 : f32 to vector<8x128xf32>
    %261 = arith.mulf %260, %259 : vector<8x128xf32>
    %262 = math.tanh %261 : vector<8x128xf32>
    %cst_106 = arith.constant 1.000000e+00 : f32
    %263 = vector.broadcast %cst_106 : f32 to vector<8x128xf32>
    %264 = arith.addf %262, %263 : vector<8x128xf32>
    %cst_107 = arith.constant 5.000000e-01 : f32
    %265 = vector.broadcast %cst_107 : f32 to vector<8x128xf32>
    %266 = arith.mulf %265, %264 : vector<8x128xf32>
    %267 = vector.extract_strided_slice %258 {offsets = [0, 128], sizes = [8, 128], strides = [1, 1]} : vector<8x512xf32> to vector<8x128xf32>
    %cst_108 = arith.constant 5.000000e-01 : f32
    %268 = vector.broadcast %cst_108 : f32 to vector<8x128xf32>
    %269 = arith.mulf %268, %267 : vector<8x128xf32>
    %270 = math.tanh %269 : vector<8x128xf32>
    %cst_109 = arith.constant 1.000000e+00 : f32
    %271 = vector.broadcast %cst_109 : f32 to vector<8x128xf32>
    %272 = arith.addf %270, %271 : vector<8x128xf32>
    %cst_110 = arith.constant 5.000000e-01 : f32
    %273 = vector.broadcast %cst_110 : f32 to vector<8x128xf32>
    %274 = arith.mulf %273, %272 : vector<8x128xf32>
    %275 = vector.extract_strided_slice %258 {offsets = [0, 256], sizes = [8, 128], strides = [1, 1]} : vector<8x512xf32> to vector<8x128xf32>
    %276 = math.tanh %275 : vector<8x128xf32>
    %277 = vector.extract_strided_slice %258 {offsets = [0, 384], sizes = [8, 128], strides = [1, 1]} : vector<8x512xf32> to vector<8x128xf32>
    %cst_111 = arith.constant 5.000000e-01 : f32
    %278 = vector.broadcast %cst_111 : f32 to vector<8x128xf32>
    %279 = arith.mulf %278, %277 : vector<8x128xf32>
    %280 = math.tanh %279 : vector<8x128xf32>
    %cst_112 = arith.constant 1.000000e+00 : f32
    %281 = vector.broadcast %cst_112 : f32 to vector<8x128xf32>
    %282 = arith.addf %280, %281 : vector<8x128xf32>
    %cst_113 = arith.constant 5.000000e-01 : f32
    %283 = vector.broadcast %cst_113 : f32 to vector<8x128xf32>
    %284 = arith.mulf %283, %282 : vector<8x128xf32>
    %285 = arith.mulf %274, %246 : vector<8x128xf32>
    %286 = arith.mulf %266, %276 : vector<8x128xf32>
    %287 = arith.addf %285, %286 : vector<8x128xf32>
    %288 = math.tanh %287 : vector<8x128xf32>
    %289 = arith.mulf %284, %288 : vector<8x128xf32>
    %290 = arith.index_cast %252 : i32 to index
    %c0_114 = arith.constant 0 : index
    %291 = vector.load %arg9[%290, %c0_114] : memref<64x128xf32, #tpu.memory_space<vmem>>, vector<8x128xf32>
    tpu.vector_store %arg9[%290, %c0_114], %289 {strides = array<i32>} : memref<64x128xf32, #tpu.memory_space<vmem>>, vector<8x128xf32>,
    %c7_i32 = arith.constant 7 : i32
    %c8_i32_115 = arith.constant 8 : i32
    %292 = arith.muli %c7_i32, %c8_i32_115 : i32
    %293 = tpu.assume_multiple %292, 8 : i32
    %c0_116 = arith.constant 0 : index
    %294 = arith.index_cast %293 : i32 to index
    %c0_117 = arith.constant 0 : index
    %295 = vector.load %arg2[%c0_116, %294, %c0_117] : memref<1x64x512xf32, #tpu.memory_space<vmem>>, vector<1x8x512xf32>
    %296 = vector.shape_cast %295 : vector<1x8x512xf32> to vector<8x512xf32>
    %c0_118 = arith.constant 0 : index
    %c0_119 = arith.constant 0 : index
    %297 = vector.load %arg3[%c0_118, %c0_119] : memref<128x512xf32, #tpu.memory_space<vmem>>, vector<128x512xf32>
    %cst_120 = arith.constant dense<0.000000e+00> : vector<8x512xf32>
    %298 = tpu.matmul %289, %297, %cst_120 {dimension_numbers = #tpu.dot_dimension_numbers<[1], [0], [0], [1], [0, 0, 1, 1], [], []>} : vector<8x128xf32>, vector<128x512xf32>, vector<8x512xf32> -> vector<8x512xf32>
    %299 = arith.addf %296, %298 : vector<8x512xf32>
    %300 = vector.extract_strided_slice %299 {offsets = [0, 0], sizes = [8, 128], strides = [1, 1]} : vector<8x512xf32> to vector<8x128xf32>
    %cst_121 = arith.constant 5.000000e-01 : f32
    %301 = vector.broadcast %cst_121 : f32 to vector<8x128xf32>
    %302 = arith.mulf %301, %300 : vector<8x128xf32>
    %303 = math.tanh %302 : vector<8x128xf32>
    %cst_122 = arith.constant 1.000000e+00 : f32
    %304 = vector.broadcast %cst_122 : f32 to vector<8x128xf32>
    %305 = arith.addf %303, %304 : vector<8x128xf32>
    %cst_123 = arith.constant 5.000000e-01 : f32
    %306 = vector.broadcast %cst_123 : f32 to vector<8x128xf32>
    %307 = arith.mulf %306, %305 : vector<8x128xf32>
    %308 = vector.extract_strided_slice %299 {offsets = [0, 128], sizes = [8, 128], strides = [1, 1]} : vector<8x512xf32> to vector<8x128xf32>
    %cst_124 = arith.constant 5.000000e-01 : f32
    %309 = vector.broadcast %cst_124 : f32 to vector<8x128xf32>
    %310 = arith.mulf %309, %308 : vector<8x128xf32>
    %311 = math.tanh %310 : vector<8x128xf32>
    %cst_125 = arith.constant 1.000000e+00 : f32
    %312 = vector.broadcast %cst_125 : f32 to vector<8x128xf32>
    %313 = arith.addf %311, %312 : vector<8x128xf32>
    %cst_126 = arith.constant 5.000000e-01 : f32
    %314 = vector.broadcast %cst_126 : f32 to vector<8x128xf32>
    %315 = arith.mulf %314, %313 : vector<8x128xf32>
    %316 = vector.extract_strided_slice %299 {offsets = [0, 256], sizes = [8, 128], strides = [1, 1]} : vector<8x512xf32> to vector<8x128xf32>
    %317 = math.tanh %316 : vector<8x128xf32>
    %318 = vector.extract_strided_slice %299 {offsets = [0, 384], sizes = [8, 128], strides = [1, 1]} : vector<8x512xf32> to vector<8x128xf32>
    %cst_127 = arith.constant 5.000000e-01 : f32
    %319 = vector.broadcast %cst_127 : f32 to vector<8x128xf32>
    %320 = arith.mulf %319, %318 : vector<8x128xf32>
    %321 = math.tanh %320 : vector<8x128xf32>
    %cst_128 = arith.constant 1.000000e+00 : f32
    %322 = vector.broadcast %cst_128 : f32 to vector<8x128xf32>
    %323 = arith.addf %321, %322 : vector<8x128xf32>
    %cst_129 = arith.constant 5.000000e-01 : f32
    %324 = vector.broadcast %cst_129 : f32 to vector<8x128xf32>
    %325 = arith.mulf %324, %323 : vector<8x128xf32>
    %326 = arith.mulf %315, %287 : vector<8x128xf32>
    %327 = arith.mulf %307, %317 : vector<8x128xf32>
    %328 = arith.addf %326, %327 : vector<8x128xf32>
    %329 = math.tanh %328 : vector<8x128xf32>
    %330 = arith.mulf %325, %329 : vector<8x128xf32>
    %331 = arith.index_cast %293 : i32 to index
    %c0_130 = arith.constant 0 : index
    %332 = vector.load %arg9[%331, %c0_130] : memref<64x128xf32, #tpu.memory_space<vmem>>, vector<8x128xf32>
    tpu.vector_store %arg9[%331, %c0_130], %330 {strides = array<i32>} : memref<64x128xf32, #tpu.memory_space<vmem>>, vector<8x128xf32>,
    %c8_i32_131 = arith.constant 8 : i32
    %c0_132 = arith.constant 0 : index
    %c0_133 = arith.constant 0 : index
    %333 = vector.load %arg7[%c0_132, %c0_133] : memref<8x128xf32, #tpu.memory_space<vmem>>, vector<8x128xf32>
    tpu.vector_store %arg7[%c0_132, %c0_133], %330 {strides = array<i32>} : memref<8x128xf32, #tpu.memory_space<vmem>>, vector<8x128xf32>,
    %c0_134 = arith.constant 0 : index
    %c0_135 = arith.constant 0 : index
    %334 = vector.load %arg8[%c0_134, %c0_135] : memref<8x128xf32, #tpu.memory_space<vmem>>, vector<8x128xf32>
    tpu.vector_store %arg8[%c0_134, %c0_135], %328 {strides = array<i32>} : memref<8x128xf32, #tpu.memory_space<vmem>>, vector<8x128xf32>,
    %c0_136 = arith.constant 0 : index
    %c0_137 = arith.constant 0 : index
    %335 = vector.load %arg9[%c0_136, %c0_137] : memref<64x128xf32, #tpu.memory_space<vmem>>, vector<64x128xf32>
    %c0_138 = arith.constant 0 : index
    %c0_139 = arith.constant 0 : index
    %336 = vector.load %arg4[%c0_138, %c0_139] : memref<128x128xf32, #tpu.memory_space<vmem>>, vector<128x128xf32>
    %cst_140 = arith.constant dense<0.000000e+00> : vector<64x128xf32>
    %337 = tpu.matmul %335, %336, %cst_140 {dimension_numbers = #tpu.dot_dimension_numbers<[1], [0], [0], [1], [0, 0, 1, 1], [], []>} : vector<64x128xf32>, vector<128x128xf32>, vector<64x128xf32> -> vector<64x128xf32>
    %c0_141 = arith.constant 0 : index
    %c0_142 = arith.constant 0 : index
    %338 = vector.load %arg5[%c0_141, %c0_142] : memref<1x128xf32, #tpu.memory_space<vmem>>, vector<1x128xf32>
    %339 = vector.broadcast %338 : vector<1x128xf32> to vector<64x128xf32>
    %340 = arith.addf %337, %339 : vector<64x128xf32>
    %341 = vector.extract_strided_slice %340 {offsets = [0, 0], sizes = [64, 1], strides = [1, 1]} : vector<64x128xf32> to vector<64x1xf32>
    %c0_143 = arith.constant 0 : index
    %c0_144 = arith.constant 0 : index
    %c0_145 = arith.constant 0 : index
    %342 = vector.load %arg6[%c0_143, %c0_144, %c0_145] : memref<1x64x1xf32, #tpu.memory_space<vmem>>, vector<1x64x1xf32>
    %343 = vector.shape_cast %342 : vector<1x64x1xf32> to vector<64x1xf32>
    %344 = vector.shape_cast %341 : vector<64x1xf32> to vector<1x64x1xf32>
    tpu.vector_store %arg6[%c0_143, %c0_144, %c0_145], %344 {strides = array<i32>} : memref<1x64x1xf32, #tpu.memory_space<vmem>>, vector<1x64x1xf32>,
    return
  }
  func.func @transform_0(%arg0: i32, %arg1: i32) -> (i32, i32, i32) {
    %c0_i32 = arith.constant 0 : i32
    %c0_i32_0 = arith.constant 0 : i32
    return %arg0, %arg1, %c0_i32 : i32, i32, i32
  }
  func.func @transform_1(%arg0: i32, %arg1: i32) -> (i32, i32) {
    %c0_i32 = arith.constant 0 : i32
    %c0_i32_0 = arith.constant 0 : i32
    %c0_i32_1 = arith.constant 0 : i32
    return %c0_i32, %c0_i32_0 : i32, i32
  }
  func.func @transform_2(%arg0: i32, %arg1: i32) -> (i32, i32) {
    %c0_i32 = arith.constant 0 : i32
    %c0_i32_0 = arith.constant 0 : i32
    %c0_i32_1 = arith.constant 0 : i32
    return %c0_i32, %c0_i32_0 : i32, i32
  }
  func.func @transform_3(%arg0: i32, %arg1: i32) -> (i32, i32) {
    %c0_i32 = arith.constant 0 : i32
    %c0_i32_0 = arith.constant 0 : i32
    %c0_i32_1 = arith.constant 0 : i32
    return %c0_i32, %c0_i32_0 : i32, i32
  }
  func.func @transform_4(%arg0: i32, %arg1: i32) -> (i32, i32, i32) {
    %c0_i32 = arith.constant 0 : i32
    %c0_i32_0 = arith.constant 0 : i32
    return %arg0, %arg1, %c0_i32 : i32, i32, i32
  }
}

</mosaic_0001>

<bundles_post_ra>
// kernel: tpu_custom_call.1
= control target key start
LH: loop header
LB: loop body
LE: loop exit
PB: predicated region body
PF: predicated region fallthrough
CT: control target
= control target key end

     0   :  { %9 = vsyncpa [#allocation6], 0  ;;  %s3454_s0 = inlined_call_operand.hbm [shape: f32[1,64,512], index: 0, kind: input, shape index: {}]   ;;  %s3455_s1 = inlined_call_operand.hbm [shape: f32[128,512], index: 1, kind: input, shape index: {}]   ;;  %s3456_s2 = inlined_call_operand.hbm [shape: f32[128,128], index: 2, kind: input, shape index: {}]   ;;  %s3457_s3 = inlined_call_operand.vmem [shape: f32[1,128], index: 3, kind: input, shape index: {}]   ;;  %s3458_s4 = inlined_call_operand.vmem [shape: f32[1,64,1], index: 4, kind: output, shape index: {}]  }
   0x1   :  { %10 = vsyncpa [#allocation8], 0  ;;  %s2892_s15 = smov [#allocation7]   ;;  %s2893_s17 = smov [#allocation5]  }
   0x2   :  { %s28_s16 = sshll.u32 %s2892_s15, 4  ;;  %s16_s18 = sshll.u32 %s2893_s17, 4  ;;  %s29_s16 = int_to_ptr.vmem [resolvable:$true] %s28_s16  ;;  %s2925_s18 = int_to_ptr.vmem [resolvable:$true] %s16_s18 }
   0x3   :  { %s2822_s21 = scalar_lea.hbm %s3455_s1, 8192 }
   0x4   :  { %p2823_p0 = scmp.ne.s32.totalorder %s3455_s1, %s2822_s21  ;;  %p2826_p1 = scmp.lt.u32.totalorder %s2822_s21, %s3455_s1 }
   0x6   :  { %p2828_p2 = pnand %p2826_p1, %p2823_p0 }
   0x8   :  { %2831 = shalt.err (!%p2828_p2)
}
   0x9   :  { %s2832_s26 = scalar_lea.vmem %s29_s16, 8192  ;;  %p2837_p4 = scmp.lt.s32.totalorder %s29_s16, %s29_s16 }
   0xa   :  { %p2833_p3 = scmp.ne.s32.totalorder %s29_s16, %s2832_s26  ;;  %p2838_p5 = scmp.lt.s32.totalorder %s2832_s26, %s2832_s26 }
   0xc   :  { %p2839_p6 = por %p2838_p5, %p2837_p4 }
   0xe   :  { %p2840_p7 = pnand %p2839_p6, %p2833_p3 }
  0x10   :  { %2843 = shalt.err (!%p2840_p7)
}
  0x11   :  { %s2894_s27 = smov 512   ;;  %s2895_s28 = smov 32  }
  0x12   :  { %34 = dma.hbm_to_vmem [thread:$0]  %s3455_s1, 8192, %s29_s16, [#allocation8], %s2894_s27, %s2894_s27, %s2895_s28  }
  0x13   :  { %s2844_s7 = scalar_lea.hbm %s3454_s0, 4096 }
  0x14   :  { %p2845_p8 = scmp.ne.s32.totalorder %s3454_s0, %s2844_s7  ;;  %p2848_p9 = scmp.lt.u32.totalorder %s2844_s7, %s3454_s0 }
  0x16   :  { %p2850_p10 = pnand %p2848_p9, %p2845_p8 }
  0x18   :  { %2853 = shalt.err (!%p2850_p10)
}
  0x19   :  { %s2854_s12 = scalar_lea.vmem %s2925_s18, 4096  ;;  %p2859_p12 = scmp.lt.s32.totalorder %s2925_s18, %s2925_s18 }
  0x1a   :  { %p2855_p11 = scmp.ne.s32.totalorder %s2925_s18, %s2854_s12  ;;  %p2860_p13 = scmp.lt.s32.totalorder %s2854_s12, %s2854_s12 }
  0x1c   :  { %p2861_p0 = por %p2860_p13, %p2859_p12 }
  0x1e   :  { %p2862_p1 = pnand %p2861_p0, %p2855_p11 }
  0x20   :  { %2865 = shalt.err (!%p2862_p1)
}
  0x21   :  { %22 = dma.hbm_to_vmem [thread:$0]  %s3454_s0, 4096, %s2925_s18, [#allocation6], %s2894_s27, %s2894_s27, %s2895_s28  }
  0x22   :  { %s2896_s14 = smov [#allocation9]   ;;  %s2866_s19 = scalar_lea.hbm %s3456_s2, 2048 }
  0x23   :  { %s40_s15 = sshll.u32 %s2896_s14, 4  ;;  %p2867_p2 = scmp.ne.s32.totalorder %s3456_s2, %s2866_s19  ;;  %s41_s15 = int_to_ptr.vmem [resolvable:$true] %s40_s15 }
  0x24   :  { %p2870_p3 = scmp.lt.u32.totalorder %s2866_s19, %s3456_s2 }
  0x26   :  { %p2872_p4 = pnand %p2870_p3, %p2867_p2 }
  0x28   :  { %2875 = shalt.err (!%p2872_p4)
}
  0x29   :  { %s2876_s24 = scalar_lea.vmem %s41_s15, 2048  ;;  %p2881_p6 = scmp.lt.s32.totalorder %s41_s15, %s41_s15 }
  0x2a   :  { %p2877_p5 = scmp.ne.s32.totalorder %s41_s15, %s2876_s24  ;;  %p2882_p7 = scmp.lt.s32.totalorder %s2876_s24, %s2876_s24 }
  0x2c   :  { %p2883_p8 = por %p2882_p7, %p2881_p6 }
  0x2e   :  { %p2884_p9 = pnand %p2883_p8, %p2877_p5 }
  0x30   :  { %2887 = shalt.err (!%p2884_p9)
}
  0x31   :  { %s2897_s0 = smov 128   ;;  %s2898_s18 = smov 8  }
  0x32   :  { %46 = dma.hbm_to_vmem [thread:$0]  %s3456_s2, 2048, %s41_s15, [#allocation8], %s2897_s0, %s2897_s0, %s2898_s18  }
  0x33   :  { %2888 = dma.done.wait [#allocation6], 4096  }
  0x34   :  { %2889 = vsyncadd [#allocation6], 4294963200 }
  0x35   :  { %2890 = dma.done.wait [#allocation8], 10240  }
  0x36   :  { %2891 = vsyncadd [#allocation8], 4294957056  ;;  %v2899_v0 = vmov 0.0   ;;  %v74_v1 = vld [vmem:[#allocation7 + $0x8] sm:$0xff]  ;;  %v73_v3 = vld [vmem:[#allocation7] sm:$0xff]  ;;  %vm2099_vm0 = vcmask 7168  }
  0x37   :  { %201 = vmatprep.mubr.f32.mxu1 %v2899_v0  ;;  %437 = vmatprep.mubr.f32.mxu0 %v2899_v0  ;;  %v78_v2 = vld [vmem:[#allocation7 + $0x28] sm:$0xff]  ;;  %v77_v5 = vld [vmem:[#allocation7 + $0x20] sm:$0xff]  ;;  %v76_v48 = vld [vmem:[#allocation7 + $0x18] sm:$0xff] }
  0x38   :  { %v2970_v4 = vpack.c.bf16 %v78_v2, %v74_v1  ;;  %v82_v6 = vld [vmem:[#allocation7 + $0x48] sm:$0xff]  ;;  %v2972_v8 = vpack.c.bf16 %v77_v5, %v73_v3  ;;  %v81_v10 = vld [vmem:[#allocation7 + $0x40] sm:$0xff]  ;;  %v80_v49 = vld [vmem:[#allocation7 + $0x38] sm:$0xff] }
  0x39   :  { %v86_v7 = vld [vmem:[#allocation7 + $0x68] sm:$0xff]  ;;  %v85_v11 = vld [vmem:[#allocation7 + $0x60] sm:$0xff]  ;;  %v3031_v51 = vpack.c.bf16 %v80_v49, %v76_v48  ;;  %v75_v52 = vld [vmem:[#allocation7 + $0x10] sm:$0xff] }
  0x3a   :  { %v2974_v9 = vpack.c.bf16 %v86_v7, %v82_v6  ;;  %v90_v12 = vld [vmem:[#allocation7 + $0x88] sm:$0xff]  ;;  %2191 = vmatprep.subr.bf16.mxu1 %v2970_v4  ;;  %2255 = vmatprep.subr.bf16.mxu0 %v2970_v4  ;;  %v2979_v14 = vpack.c.bf16 %v85_v11, %v81_v10  ;;  %v89_v16 = vld [vmem:[#allocation7 + $0x80] sm:$0xff]  ;;  %v79_v53 = vld [vmem:[#allocation7 + $0x30] sm:$0xff] }
  0x3b   :  { %v94_v13 = vld [vmem:[#allocation7 + $0xa8] sm:$0xff]  ;;  %2193 = vmatpush1.bf16.msra.mxu1 %v2972_v8  ;;  %2257 = vmatpush1.bf16.msra.mxu0 %v2972_v8  ;;  %v93_v17 = vld [vmem:[#allocation7 + $0xa0] sm:$0xff]  ;;  %v84_v54 = vld [vmem:[#allocation7 + $0x58] sm:$0xff]  ;;  %v3035_v56 = vpack.c.bf16 %v79_v53, %v75_v52 }
  0x3c   :  { %2195 = vmatprep.subr.bf16.mxu1 %v2974_v9  ;;  %v2983_v15 = vpack.c.bf16 %v94_v13, %v90_v12  ;;  %2259 = vmatprep.subr.bf16.mxu0 %v2974_v9  ;;  %v98_v18 = vld [vmem:[#allocation7 + $0xc8] sm:$0xff]  ;;  %v2987_v20 = vpack.c.bf16 %v93_v17, %v89_v16  ;;  %v97_v22 = vld [vmem:[#allocation7 + $0xc0] sm:$0xff]  ;;  %v88_v55 = vld [vmem:[#allocation7 + $0x78] sm:$0xff] }
  0x3d   :  { %v102_v19 = vld [vmem:[#allocation7 + $0xe8] sm:$0xff]  ;;  %v101_v23 = vld [vmem:[#allocation7 + $0xe0] sm:$0xff]  ;;  %v3039_v57 = vpack.c.bf16 %v88_v55, %v84_v54  ;;  %v83_v58 = vld [vmem:[#allocation7 + $0x50] sm:$0xff] }
  0x3e   :  { %v2991_v21 = vpack.c.bf16 %v102_v19, %v98_v18  ;;  %v106_v24 = vld [vmem:[#allocation7 + $0x108] sm:$0xff]  ;;  %v2995_v26 = vpack.c.bf16 %v101_v23, %v97_v22  ;;  %v105_v28 = vld [vmem:[#allocation7 + $0x100] sm:$0xff]  ;;  %v87_v59 = vld [vmem:[#allocation7 + $0x70] sm:$0xff] }
  0x3f   :  { %2197 = vmatpush1.bf16.msra.mxu1 %v2979_v14  ;;  %2261 = vmatpush1.bf16.msra.mxu0 %v2979_v14  ;;  %v110_v25 = vld [vmem:[#allocation7 + $0x128] sm:$0xff]  ;;  %v109_v29 = vld [vmem:[#allocation7 + $0x120] sm:$0xff]  ;;  %v92_v60 = vld [vmem:[#allocation7 + $0x98] sm:$0xff]  ;;  %v3044_v62 = vpack.c.bf16 %v87_v59, %v83_v58 }
  0x40   :  { %2199 = vmatprep.subr.bf16.mxu1 %v2983_v15  ;;  %2263 = vmatprep.subr.bf16.mxu0 %v2983_v15  ;;  %v2999_v27 = vpack.c.bf16 %v110_v25, %v106_v24  ;;  %v114_v30 = vld [vmem:[#allocation7 + $0x148] sm:$0xff]  ;;  %v3003_v32 = vpack.c.bf16 %v109_v29, %v105_v28  ;;  %v113_v34 = vld [vmem:[#allocation7 + $0x140] sm:$0xff]  ;;  %v96_v61 = vld [vmem:[#allocation7 + $0xb8] sm:$0xff] }
  0x41   :  { %v118_v31 = vld [vmem:[#allocation7 + $0x168] sm:$0xff]  ;;  %v117_v35 = vld [vmem:[#allocation7 + $0x160] sm:$0xff]  ;;  %v3048_v63 = vpack.c.bf16 %v96_v61, %v92_v60  ;;  %v91_v1 = vld [vmem:[#allocation7 + $0x90] sm:$0xff] }
  0x42   :  { %v3007_v33 = vpack.c.bf16 %v118_v31, %v114_v30  ;;  %v122_v36 = vld [vmem:[#allocation7 + $0x188] sm:$0xff]  ;;  %v3011_v38 = vpack.c.bf16 %v117_v35, %v113_v34  ;;  %v121_v40 = vld [vmem:[#allocation7 + $0x180] sm:$0xff]  ;;  %v95_v2 = vld [vmem:[#allocation7 + $0xb0] sm:$0xff] }
  0x43   :  { %2201 = vmatpush1.bf16.msra.mxu1 %v2987_v20  ;;  %2265 = vmatpush1.bf16.msra.mxu0 %v2987_v20  ;;  %v126_v37 = vld [vmem:[#allocation7 + $0x1a8] sm:$0xff]  ;;  %v125_v41 = vld [vmem:[#allocation7 + $0x1a0] sm:$0xff]  ;;  %v100_v3 = vld [vmem:[#allocation7 + $0xd8] sm:$0xff]  ;;  %v3051_v6 = vpack.c.bf16 %v95_v2, %v91_v1 }
  0x44   :  { %2203 = vmatprep.subr.bf16.mxu1 %v2991_v21  ;;  %2267 = vmatprep.subr.bf16.mxu0 %v2991_v21  ;;  %v3015_v39 = vpack.c.bf16 %v126_v37, %v122_v36  ;;  %v130_v42 = vld [vmem:[#allocation7 + $0x1c8] sm:$0xff]  ;;  %v3019_v44 = vpack.c.bf16 %v125_v41, %v121_v40  ;;  %v129_v46 = vld [vmem:[#allocation7 + $0x1c0] sm:$0xff]  ;;  %v104_v5 = vld [vmem:[#allocation7 + $0xf8] sm:$0xff] }
  0x45   :  { %v134_v43 = vld [vmem:[#allocation7 + $0x1e8] sm:$0xff]  ;;  %v133_v47 = vld [vmem:[#allocation7 + $0x1e0] sm:$0xff]  ;;  %v3054_v7 = vpack.c.bf16 %v104_v5, %v100_v3  ;;  %v99_v10 = vld [vmem:[#allocation7 + $0xd0] sm:$0xff] }
  0x46   :  { %v3023_v45 = vpack.c.bf16 %v134_v43, %v130_v42  ;;  %v3027_v50 = vpack.c.bf16 %v133_v47, %v129_v46  ;;  %v103_v11 = vld [vmem:[#allocation7 + $0xf0] sm:$0xff]  ;;  %v108_v12 = vld [vmem:[#allocation7 + $0x118] sm:$0xff]  ;;  %v70_v53 = vld [vmem:[#allocation5 + $0x8] sm:$0xff] }
  0x47   :  { %2205 = vmatpush1.bf16.msra.mxu1 %v2995_v26  ;;  %2269 = vmatpush1.bf16.msra.mxu0 %v2995_v26  ;;  %v112_v13 = vld [vmem:[#allocation7 + $0x138] sm:$0xff]  ;;  %v3057_v16 = vpack.c.bf16 %v103_v11, %v99_v10  ;;  %v107_v18 = vld [vmem:[#allocation7 + $0x110] sm:$0xff]  ;;  %v69_v54 = vld [vmem:[#allocation5] sm:$0xff] }
  0x48   :  { %2207 = vmatprep.subr.bf16.mxu1 %v2999_v27  ;;  %2271 = vmatprep.subr.bf16.mxu0 %v2999_v27  ;;  %v3060_v17 = vpack.c.bf16 %v112_v13, %v108_v12  ;;  %v111_v19 = vld [vmem:[#allocation7 + $0x130] sm:$0xff]  ;;  %v116_v22 = vld [vmem:[#allocation7 + $0x158] sm:$0xff] }
  0x49   :  { %v120_v23 = vld [vmem:[#allocation7 + $0x178] sm:$0xff]  ;;  %v3063_v24 = vpack.c.bf16 %v111_v19, %v107_v18  ;;  %v115_v28 = vld [vmem:[#allocation7 + $0x150] sm:$0xff] }
  0x4a   :  { %v3066_v25 = vpack.c.bf16 %v120_v23, %v116_v22  ;;  %v119_v29 = vld [vmem:[#allocation7 + $0x170] sm:$0xff]  ;;  %v124_v30 = vld [vmem:[#allocation7 + $0x198] sm:$0xff] }
  0x4b   :  { %2209 = vmatpush1.bf16.msra.mxu1 %v3003_v32  ;;  %2273 = vmatpush1.bf16.msra.mxu0 %v3003_v32  ;;  %v128_v31 = vld [vmem:[#allocation7 + $0x1b8] sm:$0xff]  ;;  %v3069_v34 = vpack.c.bf16 %v119_v29, %v115_v28  ;;  %v123_v36 = vld [vmem:[#allocation7 + $0x190] sm:$0xff] }
  0x4c   :  { %2211 = vmatprep.subr.bf16.mxu1 %v3007_v33  ;;  %2275 = vmatprep.subr.bf16.mxu0 %v3007_v33  ;;  %v3072_v35 = vpack.c.bf16 %v128_v31, %v124_v30  ;;  %v127_v37 = vld [vmem:[#allocation7 + $0x1b0] sm:$0xff]  ;;  %v132_v40 = vld [vmem:[#allocation7 + $0x1d8] sm:$0xff] }
  0x4d   :  { %v136_v41 = vld [vmem:[#allocation7 + $0x1f8] sm:$0xff]  ;;  %v3075_v42 = vpack.c.bf16 %v127_v37, %v123_v36  ;;  %v131_v46 = vld [vmem:[#allocation7 + $0x1d0] sm:$0xff] }
  0x4e   :  { %v3078_v43 = vpack.c.bf16 %v136_v41, %v132_v40  ;;  %v135_v47 = vld [vmem:[#allocation7 + $0x1f0] sm:$0xff]  ;;  %v72_v1 = vld [vmem:[#allocation5 + $0x18] sm:$0xff] }
  0x4f   :  { %2213 = vmatpush1.bf16.msra.mxu1 %v3011_v38  ;;  %2277 = vmatpush1.bf16.msra.mxu0 %v3011_v38  ;;  %v3081_v48 = vpack.c.bf16 %v135_v47, %v131_v46  ;;  %v71_v61 = vld [vmem:[#allocation5 + $0x10] sm:$0xff] }
  0x50   :  { %2215 = vmatprep.subr.bf16.mxu1 %v3015_v39  ;;  %2279 = vmatprep.subr.bf16.mxu0 %v3015_v39  ;;  %v307_v47 = vld [vmem:[#allocation5 + $0x30] sm:$0xff] }
  0x53   :  { %2217 = vmatpush1.bf16.msra.mxu1 %v3019_v44  ;;  %2281 = vmatpush1.bf16.msra.mxu0 %v3019_v44 }
  0x54   :  { %2219 = vmatprep.subr.bf16.mxu1 %v3023_v45  ;;  %2283 = vmatprep.subr.bf16.mxu0 %v3023_v45 }
  0x57   :  { %2221 = vmatpush1.bf16.msra.mxu1 %v3027_v50  ;;  %2285 = vmatpush1.bf16.msra.mxu0 %v3027_v50 }
  0x58   :  { %2223 = vmatprep.subr.bf16.mxu1 %v3031_v51  ;;  %2319 = vmatprep.subr.bf16.mxu0 %v2970_v4 }
  0x5a   :  { %202 = vmatmul.mubr.f32.vlgmr.msra.gmra.mrb[0].mxu1 %v2899_v0 }
  0x5b   :  { %2225 = vmatpush1.bf16.msra.mxu1 %v3035_v56  ;;  %272 = vmatprep.mubr.f32.mxu1 %v2899_v0 }
  0x5c   :  { %2227 = vmatprep.subr.bf16.mxu1 %v3039_v57 }
  0x5f   :  { %2229 = vmatpush1.bf16.msra.mxu1 %v3044_v62 }
  0x60   :  { %2231 = vmatprep.subr.bf16.mxu1 %v3048_v63 }
  0x63   :  { %2233 = vmatpush1.bf16.msra.mxu1 %v3051_v6 }
  0x64   :  { %2235 = vmatprep.subr.bf16.mxu1 %v3054_v7 }
  0x67   :  { %2237 = vmatpush1.bf16.msra.mxu1 %v3057_v16 }
  0x68   :  { %2239 = vmatprep.subr.bf16.mxu1 %v3060_v17 }
  0x6b   :  { %2241 = vmatpush1.bf16.msra.mxu1 %v3063_v24 }
  0x6c   :  { %2243 = vmatprep.subr.bf16.mxu1 %v3066_v25 }
  0x6f   :  { %2245 = vmatpush1.bf16.msra.mxu1 %v3069_v34 }
  0x70   :  { %2247 = vmatprep.subr.bf16.mxu1 %v3072_v35 }
  0x73   :  { %2249 = vmatpush1.bf16.msra.mxu1 %v3075_v42 }
  0x74   :  { %2251 = vmatprep.subr.bf16.mxu1 %v3078_v43 }
  0x77   :  { %2253 = vmatpush1.bf16.msra.mxu1 %v3081_v48 }
  0x78   :  { %2287 = vmatprep.subr.bf16.mxu1 %v3031_v51 }
  0x7a   :  { %273 = vmatmul.mubr.f32.vlgmr.msra.gmra.mrb[2].mxu1 %v2899_v0 }
  0x7b   :  { %2289 = vmatpush1.bf16.msra.mxu1 %v3035_v56  ;;  %508 = vmatprep.mubr.f32.mxu1 %v2899_v0 }
  0x7c   :  { %2291 = vmatprep.subr.bf16.mxu1 %v3039_v57 }
  0x7f   :  { %2293 = vmatpush1.bf16.msra.mxu1 %v3044_v62 }
  0x80   :  { %2295 = vmatprep.subr.bf16.mxu1 %v3048_v63 }
  0x83   :  { %2297 = vmatpush1.bf16.msra.mxu1 %v3051_v6 }
  0x84   :  { %2299 = vmatprep.subr.bf16.mxu1 %v3054_v7 }
  0x87   :  { %2301 = vmatpush1.bf16.msra.mxu1 %v3057_v16 }
  0x88   :  { %2303 = vmatprep.subr.bf16.mxu1 %v3060_v17 }
  0x8b   :  { %2305 = vmatpush1.bf16.msra.mxu1 %v3063_v24 }
  0x8c   :  { %2307 = vmatprep.subr.bf16.mxu1 %v3066_v25 }
  0x8f   :  { %2309 = vmatpush1.bf16.msra.mxu1 %v3069_v34 }
  0x90   :  { %2311 = vmatprep.subr.bf16.mxu1 %v3072_v35 }
  0x93   :  { %2313 = vmatpush1.bf16.msra.mxu1 %v3075_v42 }
  0x94   :  { %2315 = vmatprep.subr.bf16.mxu1 %v3078_v43 }
  0x97   :  { %2317 = vmatpush1.bf16.msra.mxu1 %v3081_v48 }
  0x98   :  { %2351 = vmatprep.subr.bf16.mxu1 %v3031_v51 }
 0x12d   :  { %v203_v49 = vpop.f32.mrb[0].mxu1 }
 0x12e   :  { %v205_v52 = vpop.f32.mrb[1].mxu1  ;;  %v279_v58 = vadd.f32 %v203_v49, %v69_v54 }
 0x12f   :  { %v280_v55 = vadd.f32 %v205_v52, %v70_v53 }
 0x130   :  { %v283_v60 = vmul.f32 0.5, %v279_v58 }
 0x131   :  { %v287_v59 = vmul.f32 0.5, %v280_v55 }
 0x133   :  { %2742 = vtanh.f32 %v287_v59 }
 0x134   :  { %2744 = vtanh.f32 %v283_v60 }
 0x13d   :  { %v2743_v11 = vpop.eup %2742 }
 0x13e   :  { %v2745_v12 = vpop.eup %2744  ;;  %v289_v13 = vadd.f32 1.0, %v2743_v11 }
 0x13f   :  { %v285_v19 = vadd.f32 1.0, %v2745_v12 }
 0x140   :  { %v290_v22 = vmul.f32 0.5, %v289_v13 }
 0x141   :  { %v286_v23 = vmul.f32 0.5, %v285_v19  ;;  %v840_v19 = vld [vmem:[#allocation7 + $0x1c8] sm:$0xff] }
 0x142   :  { %v296_v29 = vmul.f32 0.0, %v290_v22  ;;  %v844_v22 = vld [vmem:[#allocation7 + $0x1e8] sm:$0xff] }
 0x14d   :  { %v274_v2 = vpop.f32.mrb[2].mxu1 }
 0x14e   :  { %v281_v3 = vadd.f32 %v274_v2, %v71_v61  ;;  %v276_v5 = vpop.f32.mrb[3].mxu1 }
 0x14f   :  { %v282_v10 = vadd.f32 %v276_v5, %v72_v1 }
 0x150   :  { %2746 = vtanh.f32 %v281_v3 }
 0x151   :  { %v292_v18 = vmul.f32 0.5, %v282_v10 }
 0x153   :  { %2748 = vtanh.f32 %v292_v18 }
 0x15a   :  { %v2747_v28 = vpop.eup %2746 }
 0x15b   :  { %v297_v30 = vmul.f32 %v2747_v28, %v286_v23  ;;  %v3197_v23 = vpack.c.bf16 %v844_v22, %v840_v19  ;;  %v839_v28 = vld [vmem:[#allocation7 + $0x1c0] sm:$0xff] }
 0x15c   :  { %v1032_v19 = vld [vmem:[#allocation7 + $0x60] sm:$0xff] }
 0x15d   :  { %v3104_v31 = vadd.f32 %v297_v30, %v296_v29  ;;  %v2749_v36 = vpop.eup %2748  ;;  %v843_v29 = vld [vmem:[#allocation7 + $0x1e0] sm:$0xff] }
 0x15e   :  { %v294_v37 = vadd.f32 1.0, %v2749_v36  ;;  %v3199_v30 = vpack.c.bf16 %v843_v29, %v839_v28  ;;  %v543_v36 = vld [vmem:[#allocation5 + $0x48] sm:$0xff]  ;;  %v1030_v29 = vld [vmem:[#allocation7 + $0x50] sm:$0xff] }
 0x15f   :  { %2750 = vtanh.f32 %v3104_v31 }
 0x160   :  { %v295_v40 = vmul.f32 0.5, %v294_v37 }
 0x169   :  { %v2751_v41 = vpop.eup %2750 }
 0x16a   :  { %v3107_v46 = vmul.f32 %v2751_v41, %v295_v40 }
 0x16c   :  { %438 = vmatmul.mubr.f32.vlgmr.msra.gmra.mrb[0].mxu0 %v3107_v46  ;;  %509 = vmatmul.mubr.f32.vlgmr.msra.gmra.mrb[4].mxu1 %v3107_v46 }
 0x16d   :  { %2321 = vmatpush1.bf16.msra.mxu0 %v2972_v8  ;;  %2353 = vmatpush1.bf16.msra.mxu1 %v3035_v56 }
 0x16e   :  { %2323 = vmatprep.subr.bf16.mxu0 %v2974_v9  ;;  %2355 = vmatprep.subr.bf16.mxu1 %v3039_v57 }
 0x16f   :  { %674 = vmatprep.mubr.f32.mxu0 %v2899_v0  ;;  %745 = vmatprep.mubr.f32.mxu1 %v2899_v0 }
 0x171   :  { %2325 = vmatpush1.bf16.msra.mxu0 %v2979_v14  ;;  %2357 = vmatpush1.bf16.msra.mxu1 %v3044_v62 }
 0x172   :  { %2327 = vmatprep.subr.bf16.mxu0 %v2983_v15  ;;  %2359 = vmatprep.subr.bf16.mxu1 %v3048_v63 }
 0x175   :  { %2329 = vmatpush1.bf16.msra.mxu0 %v2987_v20  ;;  %2361 = vmatpush1.bf16.msra.mxu1 %v3051_v6 }
 0x176   :  { %2331 = vmatprep.subr.bf16.mxu0 %v2991_v21  ;;  %2363 = vmatprep.subr.bf16.mxu1 %v3054_v7 }
 0x179   :  { %2333 = vmatpush1.bf16.msra.mxu0 %v2995_v26  ;;  %2365 = vmatpush1.bf16.msra.mxu1 %v3057_v16  ;;  %v305_v26 = vld [vmem:[#allocation5 + $0x20] sm:$0xff] }
 0x17a   :  { %2335 = vmatprep.subr.bf16.mxu0 %v2999_v27  ;;  %2367 = vmatprep.subr.bf16.mxu1 %v3060_v17  ;;  %v306_v27 = vld [vmem:[#allocation5 + $0x28] sm:$0xff] }
 0x17d   :  { %2337 = vmatpush1.bf16.msra.mxu0 %v3003_v32  ;;  %2369 = vmatpush1.bf16.msra.mxu1 %v3063_v24 }
 0x17e   :  { %2339 = vmatprep.subr.bf16.mxu0 %v3007_v33  ;;  %2371 = vmatprep.subr.bf16.mxu1 %v3066_v25 }
 0x181   :  { %2341 = vmatpush1.bf16.msra.mxu0 %v3011_v38  ;;  %2373 = vmatpush1.bf16.msra.mxu1 %v3069_v34 }
 0x182   :  { %2343 = vmatprep.subr.bf16.mxu0 %v3015_v39  ;;  %2375 = vmatprep.subr.bf16.mxu1 %v3072_v35 }
 0x185   :  { %2345 = vmatpush1.bf16.msra.mxu0 %v3019_v44  ;;  %2377 = vmatpush1.bf16.msra.mxu1 %v3075_v42 }
 0x186   :  { %2347 = vmatprep.subr.bf16.mxu0 %v3023_v45  ;;  %2379 = vmatprep.subr.bf16.mxu1 %v3078_v43 }
 0x189   :  { %2349 = vmatpush1.bf16.msra.mxu0 %v3027_v50  ;;  %2381 = vmatpush1.bf16.msra.mxu1 %v3081_v48  ;;  %v308_v50 = vld [vmem:[#allocation5 + $0x38] sm:$0xff] }
 0x18a   :  { %2383 = vmatprep.subr.bf16.mxu0 %v2970_v4  ;;  %2415 = vmatprep.subr.bf16.mxu1 %v3031_v51 }
 0x23f   :  { %v439_v32 = vpop.f32.mrb[0].mxu0  ;;  %v510_v33 = vpop.f32.mrb[4].mxu1 }
 0x240   :  { %v515_v38 = vadd.f32 %v439_v32, %v305_v26  ;;  %v441_v39 = vpop.f32.mrb[1].mxu0  ;;  %v512_v44 = vpop.f32.mrb[5].mxu1  ;;  %v517_v53 = vadd.f32 %v510_v33, %v307_v47  ;;  %v544_v32 = vld [vmem:[#allocation5 + $0x50] sm:$0xff]  ;;  %v545_v47 = vld [vmem:[#allocation5 + $0x58] sm:$0xff] }
 0x241   :  { %v516_v49 = vadd.f32 %v441_v39, %v306_v27  ;;  %v518_v54 = vadd.f32 %v512_v44, %v308_v50 }
 0x242   :  { %v519_v45 = vmul.f32 0.5, %v515_v38 }
 0x243   :  { %v523_v52 = vmul.f32 0.5, %v516_v49  ;;  %v528_v4 = vmul.f32 0.5, %v518_v54 }
 0x244   :  { %2752 = vtanh.f32 %v519_v45 }
 0x245   :  { %2754 = vtanh.f32 %v523_v52 }
 0x246   :  { %2756 = vtanh.f32 %v517_v53 }
 0x247   :  { %2758 = vtanh.f32 %v528_v4 }
 0x24e   :  { %v2753_v55 = vpop.eup %2752 }
 0x24f   :  { %v2755_v51 = vpop.eup %2754  ;;  %v521_v58 = vadd.f32 1.0, %v2753_v55 }
 0x250   :  { %v525_v59 = vadd.f32 1.0, %v2755_v51  ;;  %v2757_v61 = vpop.eup %2756 }
 0x251   :  { %v522_v60 = vmul.f32 0.5, %v521_v58  ;;  %v2759_v10 = vpop.eup %2758 }
 0x252   :  { %v526_v1 = vmul.f32 0.5, %v525_v59  ;;  %v530_v11 = vadd.f32 1.0, %v2759_v10 }
 0x253   :  { %v533_v2 = vmul.f32 %v2757_v61, %v522_v60 }
 0x254   :  { %v532_v3 = vmul.f32 %v526_v1, %v3104_v31  ;;  %v531_v12 = vmul.f32 0.5, %v530_v11  ;;  %v542_v31 = vld [vmem:[#allocation5 + $0x40] sm:$0xff]  ;;  %v1021_v11 = vld [vmem:[#allocation7 + $0x8] sm:$0xff] }
 0x256   :  { %v3146_v5 = vadd.f32 %v533_v2, %v532_v3 }
 0x258   :  { %2760 = vtanh.f32 %v3146_v5 }
 0x262   :  { %v2761_v13 = vpop.eup %2760 }
 0x263   :  { %v3149_v18 = vmul.f32 %v2761_v13, %v531_v12  ;;  %v1023_v12 = vld [vmem:[#allocation7 + $0x18] sm:$0xff] }
 0x265   :  { %675 = vmatmul.mubr.f32.vlgmr.msra.gmra.mrb[2].mxu0 %v3149_v18  ;;  %746 = vmatmul.mubr.f32.vlgmr.msra.gmra.mrb[6].mxu1 %v3149_v18 }
 0x266   :  { %2385 = vmatpush1.bf16.msra.mxu0 %v2972_v8  ;;  %2417 = vmatpush1.bf16.msra.mxu1 %v3035_v56  ;;  %v807_v8 = vld [vmem:[#allocation7 + $0xc0] sm:$0xff] }
 0x267   :  { %2387 = vmatprep.subr.bf16.mxu0 %v2974_v9  ;;  %2419 = vmatprep.subr.bf16.mxu1 %v3039_v57  ;;  %v811_v9 = vld [vmem:[#allocation7 + $0xe0] sm:$0xff] }
 0x268   :  { %911 = vmatprep.mubr.f32.mxu0 %v2899_v0  ;;  %982 = vmatprep.mubr.f32.mxu1 %v2899_v0  ;;  %v815_v56 = vld [vmem:[#allocation7 + $0x100] sm:$0xff] }
 0x269   :  { %v819_v57 = vld [vmem:[#allocation7 + $0x120] sm:$0xff] }
 0x26a   :  { %2389 = vmatpush1.bf16.msra.mxu0 %v2979_v14  ;;  %2421 = vmatpush1.bf16.msra.mxu1 %v3044_v62  ;;  %v3176_v14 = vpack.c.bf16 %v811_v9, %v807_v8  ;;  %v3181_v62 = vpack.c.bf16 %v819_v57, %v815_v56  ;;  %v1027_v8 = vld [vmem:[#allocation7 + $0x38] sm:$0xff]  ;;  %v1020_v9 = vld [vmem:[#allocation7] sm:$0xff]  ;;  %v1022_v57 = vld [vmem:[#allocation7 + $0x10] sm:$0xff] }
 0x26b   :  { %2391 = vmatprep.subr.bf16.mxu0 %v2983_v15  ;;  %2423 = vmatprep.subr.bf16.mxu1 %v3048_v63  ;;  %v816_v15 = vld [vmem:[#allocation7 + $0x108] sm:$0xff] }
 0x26c   :  { %v824_v63 = vld [vmem:[#allocation7 + $0x148] sm:$0xff] }
 0x26e   :  { %2393 = vmatpush1.bf16.msra.mxu0 %v2987_v20  ;;  %2425 = vmatpush1.bf16.msra.mxu1 %v3051_v6  ;;  %v820_v20 = vld [vmem:[#allocation7 + $0x128] sm:$0xff] }
 0x26f   :  { %2395 = vmatprep.subr.bf16.mxu0 %v2991_v21  ;;  %2427 = vmatprep.subr.bf16.mxu1 %v3054_v7  ;;  %v3179_v21 = vpack.c.bf16 %v820_v20, %v816_v15  ;;  %v828_v6 = vld [vmem:[#allocation7 + $0x168] sm:$0xff]  ;;  %v1024_v15 = vld [vmem:[#allocation7 + $0x20] sm:$0xff]  ;;  %v3215_v20 = vpack.c.bf16 %v1027_v8, %v1023_v12  ;;  %v1067_v12 = vld [vmem:[#allocation7 + $0x178] sm:$0xff] }
 0x270   :  { %v3185_v7 = vpack.c.bf16 %v828_v6, %v824_v63  ;;  %v3217_v56 = vpack.c.bf16 %v1024_v15, %v1020_v9  ;;  %v1026_v63 = vld [vmem:[#allocation7 + $0x30] sm:$0xff] }
 0x271   :  { %v3220_v6 = vpack.c.bf16 %v1026_v63, %v1022_v57  ;;  %v1062_v9 = vld [vmem:[#allocation7 + $0x150] sm:$0xff]  ;;  %v1071_v63 = vld [vmem:[#allocation7 + $0x198] sm:$0xff] }
 0x272   :  { %2429 = vmatpush1.bf16.msra.mxu1 %v3057_v16  ;;  %2397 = vmatpush1.bf16.msra.mxu0 %v3176_v14  ;;  %v823_v16 = vld [vmem:[#allocation7 + $0x140] sm:$0xff]  ;;  %v1066_v15 = vld [vmem:[#allocation7 + $0x170] sm:$0xff] }
 0x273   :  { %2431 = vmatprep.subr.bf16.mxu1 %v3060_v17  ;;  %2399 = vmatprep.subr.bf16.mxu0 %v3179_v21  ;;  %v827_v17 = vld [vmem:[#allocation7 + $0x160] sm:$0xff]  ;;  %v3270_v57 = vpack.c.bf16 %v1066_v15, %v1062_v9 }
 0x276   :  { %2433 = vmatpush1.bf16.msra.mxu1 %v3063_v24  ;;  %2401 = vmatpush1.bf16.msra.mxu0 %v3181_v62  ;;  %v3187_v24 = vpack.c.bf16 %v827_v17, %v823_v16  ;;  %v1029_v16 = vld [vmem:[#allocation7 + $0x48] sm:$0xff] }
 0x277   :  { %2435 = vmatprep.subr.bf16.mxu1 %v3066_v25  ;;  %2403 = vmatprep.subr.bf16.mxu0 %v3185_v7  ;;  %v832_v25 = vld [vmem:[#allocation7 + $0x188] sm:$0xff] }
 0x278   :  { %v1033_v17 = vld [vmem:[#allocation7 + $0x68] sm:$0xff] }
 0x27a   :  { %2437 = vmatpush1.bf16.msra.mxu1 %v3069_v34  ;;  %2405 = vmatpush1.bf16.msra.mxu0 %v3187_v24  ;;  %v836_v34 = vld [vmem:[#allocation7 + $0x1a8] sm:$0xff] }
 0x27b   :  { %2439 = vmatprep.subr.bf16.mxu1 %v3072_v35  ;;  %v3191_v35 = vpack.c.bf16 %v836_v34, %v832_v25  ;;  %v1031_v25 = vld [vmem:[#allocation7 + $0x58] sm:$0xff]  ;;  %v3225_v34 = vpack.c.bf16 %v1033_v17, %v1029_v16 }
 0x27c   :  { %v1075_v16 = vld [vmem:[#allocation7 + $0x1b8] sm:$0xff] }
 0x27d   :  { %2407 = vmatprep.subr.bf16.mxu0 %v3191_v35  ;;  %v3276_v17 = vpack.c.bf16 %v1075_v16, %v1071_v63 }
 0x27e   :  { %2441 = vmatpush1.bf16.msra.mxu1 %v3075_v42  ;;  %v831_v42 = vld [vmem:[#allocation7 + $0x180] sm:$0xff] }
 0x27f   :  { %2443 = vmatprep.subr.bf16.mxu1 %v3078_v43  ;;  %v835_v43 = vld [vmem:[#allocation7 + $0x1a0] sm:$0xff] }
 0x282   :  { %2445 = vmatpush1.bf16.msra.mxu1 %v3081_v48  ;;  %v3193_v48 = vpack.c.bf16 %v835_v43, %v831_v42  ;;  %v1035_v42 = vld [vmem:[#allocation7 + $0x78] sm:$0xff]  ;;  %v1028_v43 = vld [vmem:[#allocation7 + $0x40] sm:$0xff] }
 0x283   :  { %2479 = vmatprep.subr.bf16.mxu1 %v3215_v20  ;;  %v3227_v22 = vpack.c.bf16 %v1035_v42, %v1031_v25  ;;  %v3229_v28 = vpack.c.bf16 %v1032_v19, %v1028_v43  ;;  %v1070_v25 = vld [vmem:[#allocation7 + $0x190] sm:$0xff]  ;;  %v1079_v19 = vld [vmem:[#allocation7 + $0x1d8] sm:$0xff] }
 0x284   :  { %2409 = vmatpush1.bf16.msra.mxu0 %v3193_v48  ;;  %v1074_v42 = vld [vmem:[#allocation7 + $0x1b0] sm:$0xff] }
 0x285   :  { %2411 = vmatprep.subr.bf16.mxu0 %v3197_v23  ;;  %v3278_v43 = vpack.c.bf16 %v1074_v42, %v1070_v25 }
 0x288   :  { %2413 = vmatpush1.bf16.msra.mxu0 %v3199_v30 }
 0x338   :  { %v676_v37 = vpop.f32.mrb[2].mxu0  ;;  %v747_v40 = vpop.f32.mrb[6].mxu1 }
 0x339   :  { %v752_v41 = vadd.f32 %v676_v37, %v542_v31  ;;  %v678_v26 = vpop.f32.mrb[3].mxu0  ;;  %v749_v27 = vpop.f32.mrb[7].mxu1  ;;  %v754_v44 = vadd.f32 %v747_v40, %v544_v32  ;;  %v1034_v31 = vld [vmem:[#allocation7 + $0x70] sm:$0xff]  ;;  %v1037_v37 = vld [vmem:[#allocation7 + $0x88] sm:$0xff]  ;;  %v1036_v32 = vld [vmem:[#allocation7 + $0x80] sm:$0xff] }
 0x33a   :  { %v753_v33 = vadd.f32 %v678_v26, %v543_v36  ;;  %v755_v49 = vadd.f32 %v749_v27, %v545_v47  ;;  %v3232_v36 = vpack.c.bf16 %v1034_v31, %v1030_v29  ;;  %v1041_v40 = vld [vmem:[#allocation7 + $0xa8] sm:$0xff]  ;;  %v1043_v27 = vld [vmem:[#allocation7 + $0xb8] sm:$0xff]  ;;  %v1042_v47 = vld [vmem:[#allocation7 + $0xb0] sm:$0xff] }
 0x33b   :  { %v756_v38 = vmul.f32 0.5, %v752_v41  ;;  %v1039_v41 = vld [vmem:[#allocation7 + $0x98] sm:$0xff]  ;;  %v3237_v26 = vpack.c.bf16 %v1041_v40, %v1037_v37  ;;  %v1078_v37 = vld [vmem:[#allocation7 + $0x1d0] sm:$0xff] }
 0x33c   :  { %v760_v39 = vmul.f32 0.5, %v753_v33  ;;  %v765_v45 = vmul.f32 0.5, %v755_v49  ;;  %v1040_v33 = vld [vmem:[#allocation7 + $0xa0] sm:$0xff]  ;;  %v1083_v29 = vld [vmem:[#allocation7 + $0x1f8] sm:$0xff]  ;;  %v1082_v40 = vld [vmem:[#allocation7 + $0x1f0] sm:$0xff] }
 0x33d   :  { %2762 = vtanh.f32 %v756_v38  ;;  %v3239_v38 = vpack.c.bf16 %v1043_v27, %v1039_v41  ;;  %v3284_v31 = vpack.c.bf16 %v1083_v29, %v1079_v19  ;;  %v3286_v41 = vpack.c.bf16 %v1082_v40, %v1078_v37  ;;  %v779_v27 = vld [vmem:[#allocation5 + $0x60] sm:$0xff] }
 0x33e   :  { %2764 = vtanh.f32 %v760_v39  ;;  %v3241_v39 = vpack.c.bf16 %v1040_v33, %v1036_v32  ;;  %v780_v32 = vld [vmem:[#allocation5 + $0x68] sm:$0xff] }
 0x33f   :  { %2766 = vtanh.f32 %v754_v44  ;;  %v1038_v44 = vld [vmem:[#allocation7 + $0x90] sm:$0xff] }
 0x340   :  { %2768 = vtanh.f32 %v765_v45  ;;  %v3244_v49 = vpack.c.bf16 %v1042_v47, %v1038_v44  ;;  %v1045_v45 = vld [vmem:[#allocation7 + $0xc8] sm:$0xff] }
 0x347   :  { %v2763_v52 = vpop.eup %2762 }
 0x348   :  { %v2765_v53 = vpop.eup %2764  ;;  %v758_v50 = vadd.f32 1.0, %v2763_v52  ;;  %v1049_v52 = vld [vmem:[#allocation7 + $0xe8] sm:$0xff] }
 0x349   :  { %v762_v54 = vadd.f32 1.0, %v2765_v53  ;;  %v2767_v55 = vpop.eup %2766  ;;  %v1047_v53 = vld [vmem:[#allocation7 + $0xd8] sm:$0xff] }
 0x34a   :  { %v759_v4 = vmul.f32 0.5, %v758_v50  ;;  %v2769_v61 = vpop.eup %2768  ;;  %v3249_v50 = vpack.c.bf16 %v1049_v52, %v1045_v45 }
 0x34b   :  { %v763_v51 = vmul.f32 0.5, %v762_v54  ;;  %v767_v1 = vadd.f32 1.0, %v2769_v61  ;;  %v1051_v54 = vld [vmem:[#allocation7 + $0xf8] sm:$0xff] }
 0x34c   :  { %v770_v58 = vmul.f32 %v2767_v55, %v759_v4  ;;  %v1046_v4 = vld [vmem:[#allocation7 + $0xd0] sm:$0xff]  ;;  %v1059_v61 = vld [vmem:[#allocation7 + $0x138] sm:$0xff] }
 0x34d   :  { %v769_v59 = vmul.f32 %v763_v51, %v3146_v5  ;;  %v768_v2 = vmul.f32 0.5, %v767_v1  ;;  %v1025_v5 = vld [vmem:[#allocation7 + $0x28] sm:$0xff]  ;;  %v1050_v55 = vld [vmem:[#allocation7 + $0xf0] sm:$0xff]  ;;  %v3251_v51 = vpack.c.bf16 %v1051_v54, %v1047_v53 }
 0x34e   :  { %v3213_v13 = vpack.c.bf16 %v1025_v5, %v1021_v11  ;;  %v1063_v5 = vld [vmem:[#allocation7 + $0x158] sm:$0xff]  ;;  %v781_v53 = vld [vmem:[#allocation5 + $0x70] sm:$0xff] }
 0x34f   :  { %v3204_v60 = vadd.f32 %v770_v58, %v769_v59  ;;  %v3253_v58 = vpack.c.bf16 %v1050_v55, %v1046_v4  ;;  %v1055_v59 = vld [vmem:[#allocation7 + $0x118] sm:$0xff]  ;;  %v3268_v8 = vpack.c.bf16 %v1067_v12, %v1063_v5 }
 0x350   :  { %2447 = vmatprep.subr.bf16.mxu0 %v3213_v13  ;;  %v3260_v1 = vpack.c.bf16 %v1059_v61, %v1055_v59  ;;  %v782_v61 = vld [vmem:[#allocation5 + $0x78] sm:$0xff] }
 0x351   :  { %2770 = vtanh.f32 %v3204_v60 }
 0x35b   :  { %v2771_v3 = vpop.eup %2770 }
 0x35c   :  { %v3207_v10 = vmul.f32 %v2771_v3, %v768_v2  ;;  %v1054_v2 = vld [vmem:[#allocation7 + $0x110] sm:$0xff] }
 0x35d   :  { %v1058_v3 = vld [vmem:[#allocation7 + $0x130] sm:$0xff] }
 0x35e   :  { %912 = vmatmul.mubr.f32.vlgmr.msra.gmra.mrb[4].mxu0 %v3207_v10  ;;  %983 = vmatmul.mubr.f32.vlgmr.msra.gmra.mrb[8].mxu1 %v3207_v10  ;;  %v3262_v11 = vpack.c.bf16 %v1058_v3, %v1054_v2 }
 0x35f   :  { %1148 = vmatprep.mubr.f32.mxu0 %v2899_v0  ;;  %1219 = vmatprep.mubr.f32.mxu1 %v2899_v0 }
 0x360   :  { %2449 = vmatpush1.bf16.msra.mxu0 %v3217_v56  ;;  %2481 = vmatpush1.bf16.msra.mxu1 %v3220_v6 }
 0x361   :  { %2451 = vmatprep.subr.bf16.mxu0 %v3225_v34  ;;  %2483 = vmatprep.subr.bf16.mxu1 %v3227_v22 }
 0x364   :  { %2453 = vmatpush1.bf16.msra.mxu0 %v3229_v28  ;;  %2485 = vmatpush1.bf16.msra.mxu1 %v3232_v36 }
 0x365   :  { %2455 = vmatprep.subr.bf16.mxu0 %v3237_v26  ;;  %2487 = vmatprep.subr.bf16.mxu1 %v3239_v38 }
 0x368   :  { %2457 = vmatpush1.bf16.msra.mxu0 %v3241_v39  ;;  %2489 = vmatpush1.bf16.msra.mxu1 %v3244_v49 }
 0x369   :  { %2459 = vmatprep.subr.bf16.mxu0 %v3249_v50  ;;  %2491 = vmatprep.subr.bf16.mxu1 %v3251_v51 }
 0x36c   :  { %2461 = vmatpush1.bf16.msra.mxu0 %v3176_v14  ;;  %2493 = vmatpush1.bf16.msra.mxu1 %v3253_v58 }
 0x36d   :  { %2463 = vmatprep.subr.bf16.mxu0 %v3179_v21  ;;  %2495 = vmatprep.subr.bf16.mxu1 %v3260_v1 }
 0x370   :  { %2465 = vmatpush1.bf16.msra.mxu0 %v3181_v62  ;;  %2497 = vmatpush1.bf16.msra.mxu1 %v3262_v11 }
 0x371   :  { %2467 = vmatprep.subr.bf16.mxu0 %v3185_v7  ;;  %2499 = vmatprep.subr.bf16.mxu1 %v3268_v8 }
 0x374   :  { %2469 = vmatpush1.bf16.msra.mxu0 %v3187_v24  ;;  %2501 = vmatpush1.bf16.msra.mxu1 %v3270_v57 }
 0x375   :  { %2471 = vmatprep.subr.bf16.mxu0 %v3191_v35  ;;  %2503 = vmatprep.subr.bf16.mxu1 %v3276_v17 }
 0x378   :  { %2473 = vmatpush1.bf16.msra.mxu0 %v3193_v48  ;;  %2505 = vmatpush1.bf16.msra.mxu1 %v3278_v43 }
 0x379   :  { %2475 = vmatprep.subr.bf16.mxu0 %v3197_v23  ;;  %2507 = vmatprep.subr.bf16.mxu1 %v3284_v31 }
 0x37c   :  { %2477 = vmatpush1.bf16.msra.mxu0 %v3199_v30  ;;  %2509 = vmatpush1.bf16.msra.mxu1 %v3286_v41 }
 0x37d   :  { %2511 = vmatprep.subr.bf16.mxu0 %v3213_v13  ;;  %2543 = vmatprep.subr.bf16.mxu1 %v3215_v20 }
 0x431   :  { %v913_v33 = vpop.f32.mrb[4].mxu0  ;;  %v984_v44 = vpop.f32.mrb[8].mxu1 }
 0x432   :  { %v989_v47 = vadd.f32 %v913_v33, %v779_v27  ;;  %v915_v45 = vpop.f32.mrb[5].mxu0  ;;  %v986_v52 = vpop.f32.mrb[9].mxu1  ;;  %v991_v59 = vadd.f32 %v984_v44, %v781_v53  ;;  %v1017_v44 = vld [vmem:[#allocation5 + $0x88] sm:$0xff] }
 0x433   :  { %v990_v54 = vadd.f32 %v915_v45, %v780_v32  ;;  %v992_v2 = vadd.f32 %v986_v52, %v782_v61 }
 0x434   :  { %v993_v4 = vmul.f32 0.5, %v989_v47 }
 0x435   :  { %v997_v55 = vmul.f32 0.5, %v990_v54  ;;  %v1002_v3 = vmul.f32 0.5, %v992_v2 }
 0x436   :  { %2772 = vtanh.f32 %v993_v4  ;;  %v1018_v4 = vld [vmem:[#allocation5 + $0x90] sm:$0xff] }
 0x437   :  { %2774 = vtanh.f32 %v997_v55 }
 0x438   :  { %2776 = vtanh.f32 %v991_v59 }
 0x439   :  { %2778 = vtanh.f32 %v1002_v3  ;;  %v1019_v3 = vld [vmem:[#allocation5 + $0x98] sm:$0xff] }
 0x440   :  { %v2773_v5 = vpop.eup %2772 }
 0x441   :  { %v2775_v12 = vpop.eup %2774  ;;  %v995_v9 = vadd.f32 1.0, %v2773_v5 }
 0x442   :  { %v999_v15 = vadd.f32 1.0, %v2775_v12  ;;  %v2777_v16 = vpop.eup %2776 }
 0x443   :  { %v996_v63 = vmul.f32 0.5, %v995_v9  ;;  %v2779_v37 = vpop.eup %2778 }
 0x444   :  { %v1000_v25 = vmul.f32 0.5, %v999_v15  ;;  %v1004_v40 = vadd.f32 1.0, %v2779_v37 }
 0x445   :  { %v1007_v42 = vmul.f32 %v2777_v16, %v996_v63 }
 0x446   :  { %v1006_v19 = vmul.f32 %v1000_v25, %v3204_v60  ;;  %v1005_v27 = vmul.f32 0.5, %v1004_v40  ;;  %v1016_v60 = vld [vmem:[#allocation5 + $0x80] sm:$0xff] }
 0x448   :  { %v3294_v29 = vadd.f32 %v1007_v42, %v1006_v19 }
 0x44a   :  { %2780 = vtanh.f32 %v3294_v29 }
 0x454   :  { %v2781_v32 = vpop.eup %2780 }
 0x455   :  { %v3297_v33 = vmul.f32 %v2781_v32, %v1005_v27 }
 0x457   :  { %1149 = vmatmul.mubr.f32.vlgmr.msra.gmra.mrb[6].mxu0 %v3297_v33  ;;  %1220 = vmatmul.mubr.f32.vlgmr.msra.gmra.mrb[10].mxu1 %v3297_v33 }
 0x458   :  { %2513 = vmatpush1.bf16.msra.mxu0 %v3217_v56  ;;  %2545 = vmatpush1.bf16.msra.mxu1 %v3220_v6 }
 0x459   :  { %2515 = vmatprep.subr.bf16.mxu0 %v3225_v34  ;;  %2547 = vmatprep.subr.bf16.mxu1 %v3227_v22 }
 0x45a   :  { %1385 = vmatprep.mubr.f32.mxu0 %v2899_v0  ;;  %1456 = vmatprep.mubr.f32.mxu1 %v2899_v0 }
 0x45c   :  { %2517 = vmatpush1.bf16.msra.mxu0 %v3229_v28  ;;  %2549 = vmatpush1.bf16.msra.mxu1 %v3232_v36 }
 0x45d   :  { %2519 = vmatprep.subr.bf16.mxu0 %v3237_v26  ;;  %2551 = vmatprep.subr.bf16.mxu1 %v3239_v38 }
 0x460   :  { %2521 = vmatpush1.bf16.msra.mxu0 %v3241_v39  ;;  %2553 = vmatpush1.bf16.msra.mxu1 %v3244_v49 }
 0x461   :  { %2523 = vmatprep.subr.bf16.mxu0 %v3249_v50  ;;  %2555 = vmatprep.subr.bf16.mxu1 %v3251_v51 }
 0x464   :  { %2525 = vmatpush1.bf16.msra.mxu0 %v3176_v14  ;;  %2557 = vmatpush1.bf16.msra.mxu1 %v3253_v58 }
 0x465   :  { %2527 = vmatprep.subr.bf16.mxu0 %v3179_v21  ;;  %2559 = vmatprep.subr.bf16.mxu1 %v3260_v1 }
 0x468   :  { %2529 = vmatpush1.bf16.msra.mxu0 %v3181_v62  ;;  %2561 = vmatpush1.bf16.msra.mxu1 %v3262_v11 }
 0x469   :  { %2531 = vmatprep.subr.bf16.mxu0 %v3185_v7  ;;  %2563 = vmatprep.subr.bf16.mxu1 %v3268_v8 }
 0x46c   :  { %2533 = vmatpush1.bf16.msra.mxu0 %v3187_v24  ;;  %2565 = vmatpush1.bf16.msra.mxu1 %v3270_v57 }
 0x46d   :  { %2535 = vmatprep.subr.bf16.mxu0 %v3191_v35  ;;  %2567 = vmatprep.subr.bf16.mxu1 %v3276_v17 }
 0x470   :  { %2537 = vmatpush1.bf16.msra.mxu0 %v3193_v48  ;;  %2569 = vmatpush1.bf16.msra.mxu1 %v3278_v43 }
 0x471   :  { %2539 = vmatprep.subr.bf16.mxu0 %v3197_v23  ;;  %2571 = vmatprep.subr.bf16.mxu1 %v3284_v31 }
 0x474   :  { %2541 = vmatpush1.bf16.msra.mxu0 %v3199_v30  ;;  %2573 = vmatpush1.bf16.msra.mxu1 %v3286_v41 }
 0x475   :  { %2575 = vmatprep.subr.bf16.mxu0 %v3213_v13  ;;  %2607 = vmatprep.subr.bf16.mxu1 %v3215_v20 }
 0x52a   :  { %v1150_v47 = vpop.f32.mrb[6].mxu0  ;;  %v1221_v45 = vpop.f32.mrb[10].mxu1 }
 0x52b   :  { %v1226_v52 = vadd.f32 %v1150_v47, %v1016_v60  ;;  %v1152_v53 = vpop.f32.mrb[7].mxu0  ;;  %v1223_v54 = vpop.f32.mrb[11].mxu1  ;;  %v1228_v2 = vadd.f32 %v1221_v45, %v1018_v4 }
 0x52c   :  { %v1227_v55 = vadd.f32 %v1152_v53, %v1017_v44  ;;  %v1229_v5 = vadd.f32 %v1223_v54, %v1019_v3 }
 0x52d   :  { %v1230_v59 = vmul.f32 0.5, %v1226_v52 }
 0x52e   :  { %v1234_v61 = vmul.f32 0.5, %v1227_v55  ;;  %v1239_v12 = vmul.f32 0.5, %v1229_v5 }
 0x52f   :  { %2782 = vtanh.f32 %v1230_v59 }
 0x530   :  { %2784 = vtanh.f32 %v1234_v61 }
 0x531   :  { %2786 = vtanh.f32 %v1228_v2 }
 0x532   :  { %2788 = vtanh.f32 %v1239_v12 }
 0x539   :  { %v2783_v9 = vpop.eup %2782 }
 0x53a   :  { %v2785_v15 = vpop.eup %2784  ;;  %v1232_v63 = vadd.f32 1.0, %v2783_v9 }
 0x53b   :  { %v1236_v16 = vadd.f32 1.0, %v2785_v15  ;;  %v2787_v42 = vpop.eup %2786 }
 0x53c   :  { %v1233_v25 = vmul.f32 0.5, %v1232_v63  ;;  %v2789_v32 = vpop.eup %2788 }
 0x53d   :  { %v1237_v19 = vmul.f32 0.5, %v1236_v16  ;;  %v1241_v60 = vadd.f32 1.0, %v2789_v32  ;;  %v1791_v32 = vld [vmem:[#allocation7 + $0x1e0] sm:$0xff] }
 0x53e   :  { %v1244_v37 = vmul.f32 %v2787_v42, %v1233_v25 }
 0x53f   :  { %v1243_v40 = vmul.f32 %v1237_v19, %v3294_v29  ;;  %v1242_v44 = vmul.f32 0.5, %v1241_v60  ;;  %v1255_v29 = vld [vmem:[#allocation5 + $0xb0] sm:$0xff] }
 0x541   :  { %v3336_v27 = vadd.f32 %v1244_v37, %v1243_v40  ;;  %v1792_v37 = vld [vmem:[#allocation7 + $0x1e8] sm:$0xff] }
 0x543   :  { %2790 = vtanh.f32 %v3336_v27 }
 0x54d   :  { %v2791_v47 = vpop.eup %2790 }
 0x54e   :  { %v3339_v45 = vmul.f32 %v2791_v47, %v1242_v44  ;;  %v1971_v44 = vld [vmem:[#allocation9] sm:$0xff]  ;;  %v1972_v47 = vld [vmem:[#allocation9 + $0x8] sm:$0xff] }
 0x550   :  { %1386 = vmatmul.mubr.f32.vlgmr.msra.gmra.mrb[8].mxu0 %v3339_v45  ;;  %1457 = vmatmul.mubr.f32.vlgmr.msra.gmra.mrb[12].mxu1 %v3339_v45 }
 0x551   :  { %2577 = vmatpush1.bf16.msra.mxu0 %v3217_v56  ;;  %2609 = vmatpush1.bf16.msra.mxu1 %v3220_v6 }
 0x552   :  { %2579 = vmatprep.subr.bf16.mxu0 %v3225_v34  ;;  %2611 = vmatprep.subr.bf16.mxu1 %v3227_v22 }
 0x553   :  { %1622 = vmatprep.mubr.f32.mxu0 %v2899_v0  ;;  %1693 = vmatprep.mubr.f32.mxu1 %v2899_v0 }
 0x555   :  { %2581 = vmatpush1.bf16.msra.mxu0 %v3229_v28  ;;  %2613 = vmatpush1.bf16.msra.mxu1 %v3232_v36 }
 0x556   :  { %2583 = vmatprep.subr.bf16.mxu0 %v3237_v26  ;;  %2615 = vmatprep.subr.bf16.mxu1 %v3239_v38 }
 0x559   :  { %2585 = vmatpush1.bf16.msra.mxu0 %v3241_v39  ;;  %2617 = vmatpush1.bf16.msra.mxu1 %v3244_v49 }
 0x55a   :  { %2587 = vmatprep.subr.bf16.mxu0 %v3249_v50  ;;  %2619 = vmatprep.subr.bf16.mxu1 %v3251_v51 }
 0x55d   :  { %2589 = vmatpush1.bf16.msra.mxu0 %v3176_v14  ;;  %2621 = vmatpush1.bf16.msra.mxu1 %v3253_v58  ;;  %v1253_v14 = vld [vmem:[#allocation5 + $0xa0] sm:$0xff] }
 0x55e   :  { %2591 = vmatprep.subr.bf16.mxu0 %v3179_v21  ;;  %2623 = vmatprep.subr.bf16.mxu1 %v3260_v1  ;;  %v1254_v21 = vld [vmem:[#allocation5 + $0xa8] sm:$0xff] }
 0x561   :  { %2593 = vmatpush1.bf16.msra.mxu0 %v3181_v62  ;;  %2625 = vmatpush1.bf16.msra.mxu1 %v3262_v11 }
 0x562   :  { %2595 = vmatprep.subr.bf16.mxu0 %v3185_v7  ;;  %2627 = vmatprep.subr.bf16.mxu1 %v3268_v8 }
 0x565   :  { %2597 = vmatpush1.bf16.msra.mxu0 %v3187_v24  ;;  %2629 = vmatpush1.bf16.msra.mxu1 %v3270_v57 }
 0x566   :  { %2599 = vmatprep.subr.bf16.mxu0 %v3191_v35  ;;  %2631 = vmatprep.subr.bf16.mxu1 %v3276_v17 }
 0x569   :  { %2601 = vmatpush1.bf16.msra.mxu0 %v3193_v48  ;;  %2633 = vmatpush1.bf16.msra.mxu1 %v3278_v43 }
 0x56a   :  { %2603 = vmatprep.subr.bf16.mxu0 %v3197_v23  ;;  %2635 = vmatprep.subr.bf16.mxu1 %v3284_v31 }
 0x56d   :  { %2605 = vmatpush1.bf16.msra.mxu0 %v3199_v30  ;;  %2637 = vmatpush1.bf16.msra.mxu1 %v3286_v41  ;;  %v1256_v30 = vld [vmem:[#allocation5 + $0xb8] sm:$0xff] }
 0x56e   :  { %2639 = vmatprep.subr.bf16.mxu0 %v3213_v13  ;;  %2671 = vmatprep.subr.bf16.mxu1 %v3215_v20 }
 0x623   :  { %v1387_v62 = vpop.f32.mrb[8].mxu0  ;;  %v1458_v7 = vpop.f32.mrb[12].mxu1 }
 0x624   :  { %v1463_v24 = vadd.f32 %v1387_v62, %v1253_v14  ;;  %v1389_v35 = vpop.f32.mrb[9].mxu0  ;;  %v1460_v48 = vpop.f32.mrb[13].mxu1  ;;  %v1465_v54 = vadd.f32 %v1458_v7, %v1255_v29  ;;  %v2702_v14 = vpack.c.bf16 %v1972_v47, %v1971_v44  ;;  %v1491_v62 = vld [vmem:[#allocation5 + $0xc8] sm:$0xff] }
 0x625   :  { %v1464_v52 = vadd.f32 %v1389_v35, %v1254_v21  ;;  %v1466_v4 = vadd.f32 %v1460_v48, %v1256_v30  ;;  %v1490_v21 = vld [vmem:[#allocation5 + $0xc0] sm:$0xff] }
 0x626   :  { %v1467_v23 = vmul.f32 0.5, %v1463_v24 }
 0x627   :  { %v1471_v53 = vmul.f32 0.5, %v1464_v52  ;;  %v1476_v13 = vmul.f32 0.5, %v1466_v4  ;;  %v1492_v52 = vld [vmem:[#allocation5 + $0xd0] sm:$0xff]  ;;  %v1493_v4 = vld [vmem:[#allocation5 + $0xd8] sm:$0xff] }
 0x628   :  { %2792 = vtanh.f32 %v1467_v23 }
 0x629   :  { %2794 = vtanh.f32 %v1471_v53 }
 0x62a   :  { %2796 = vtanh.f32 %v1465_v54 }
 0x62b   :  { %2798 = vtanh.f32 %v1476_v13 }
 0x632   :  { %v2793_v55 = vpop.eup %2792 }
 0x633   :  { %v2795_v20 = vpop.eup %2794  ;;  %v1469_v59 = vadd.f32 1.0, %v2793_v55 }
 0x634   :  { %v1473_v61 = vadd.f32 1.0, %v2795_v20  ;;  %v2797_v3 = vpop.eup %2796 }
 0x635   :  { %v1470_v2 = vmul.f32 0.5, %v1469_v59  ;;  %v2799_v63 = vpop.eup %2798 }
 0x636   :  { %v1474_v5 = vmul.f32 0.5, %v1473_v61  ;;  %v1478_v16 = vadd.f32 1.0, %v2799_v63 }
 0x637   :  { %v1481_v12 = vmul.f32 %v2797_v3, %v1470_v2 }
 0x638   :  { %v1480_v9 = vmul.f32 %v1474_v5, %v3336_v27  ;;  %v1479_v25 = vmul.f32 0.5, %v1478_v16  ;;  %v1787_v27 = vld [vmem:[#allocation7 + $0x1c0] sm:$0xff] }
 0x639   :  { %v2668_v60 = vpack.c.bf16 %v1791_v32, %v1787_v27 }
 0x63a   :  { %v3378_v15 = vadd.f32 %v1481_v12, %v1480_v9 }
 0x63c   :  { %2800 = vtanh.f32 %v3378_v15 }
 0x646   :  { %v2801_v42 = vpop.eup %2800 }
 0x647   :  { %v3381_v19 = vmul.f32 %v2801_v42, %v1479_v25 }
 0x649   :  { %1623 = vmatmul.mubr.f32.vlgmr.msra.gmra.mrb[10].mxu0 %v3381_v19  ;;  %1694 = vmatmul.mubr.f32.vlgmr.msra.gmra.mrb[14].mxu1 %v3381_v19 }
 0x64a   :  { %2641 = vmatpush1.bf16.msra.mxu0 %v3217_v56  ;;  %2673 = vmatpush1.bf16.msra.mxu1 %v3220_v6  ;;  %v1759_v56 = vld [vmem:[#allocation7 + $0xe0] sm:$0xff] }
 0x64b   :  { %2643 = vmatprep.subr.bf16.mxu0 %v3225_v34  ;;  %2675 = vmatprep.subr.bf16.mxu1 %v3227_v22  ;;  %v1764_v34 = vld [vmem:[#allocation7 + $0x108] sm:$0xff] }
 0x64c   :  { %1859 = vmatprep.mubr.f32.mxu0 %v2899_v0  ;;  %1930 = vmatprep.mubr.f32.mxu1 %v2899_v0  ;;  %v1755_v0 = vld [vmem:[#allocation7 + $0xc0] sm:$0xff]  ;;  %v1768_v22 = vld [vmem:[#allocation7 + $0x128] sm:$0xff] }
 0x64d   :  { %v2652_v6 = vpack.c.bf16 %v1759_v56, %v1755_v0  ;;  %v1973_v0 = vld [vmem:[#allocation9 + $0x10] sm:$0xff]  ;;  %v1974_v56 = vld [vmem:[#allocation9 + $0x18] sm:$0xff] }
 0x64e   :  { %2645 = vmatpush1.bf16.msra.mxu0 %v3229_v28  ;;  %2677 = vmatpush1.bf16.msra.mxu1 %v3232_v36  ;;  %v2654_v28 = vpack.c.bf16 %v1768_v22, %v1764_v34  ;;  %v1763_v36 = vld [vmem:[#allocation7 + $0x100] sm:$0xff] }
 0x64f   :  { %2647 = vmatprep.subr.bf16.mxu0 %v3237_v26  ;;  %2679 = vmatprep.subr.bf16.mxu1 %v3239_v38  ;;  %v1767_v26 = vld [vmem:[#allocation7 + $0x120] sm:$0xff] }
 0x650   :  { %v2656_v38 = vpack.c.bf16 %v1767_v26, %v1763_v36  ;;  %v1975_v36 = vld [vmem:[#allocation9 + $0x20] sm:$0xff]  ;;  %v1976_v26 = vld [vmem:[#allocation9 + $0x28] sm:$0xff] }
 0x652   :  { %2649 = vmatpush1.bf16.msra.mxu0 %v3241_v39  ;;  %2681 = vmatpush1.bf16.msra.mxu1 %v3244_v49  ;;  %v1772_v39 = vld [vmem:[#allocation7 + $0x148] sm:$0xff] }
 0x653   :  { %2651 = vmatprep.subr.bf16.mxu0 %v3249_v50  ;;  %2683 = vmatprep.subr.bf16.mxu1 %v3251_v51  ;;  %v1776_v49 = vld [vmem:[#allocation7 + $0x168] sm:$0xff]  ;;  %v1771_v51 = vld [vmem:[#allocation7 + $0x140] sm:$0xff] }
 0x654   :  { %v2658_v50 = vpack.c.bf16 %v1776_v49, %v1772_v39  ;;  %v1978_v39 = vld [vmem:[#allocation9 + $0x38] sm:$0xff] }
 0x656   :  { %2685 = vmatpush1.bf16.msra.mxu1 %v3253_v58  ;;  %2653 = vmatpush1.bf16.msra.mxu0 %v2652_v6  ;;  %v1775_v58 = vld [vmem:[#allocation7 + $0x160] sm:$0xff] }
 0x657   :  { %2687 = vmatprep.subr.bf16.mxu1 %v3260_v1  ;;  %2655 = vmatprep.subr.bf16.mxu0 %v2654_v28  ;;  %v2660_v1 = vpack.c.bf16 %v1775_v58, %v1771_v51  ;;  %v2706_v28 = vpack.c.bf16 %v1974_v56, %v1973_v0  ;;  %v1980_v51 = vld [vmem:[#allocation9 + $0x48] sm:$0xff] }
 0x65a   :  { %2689 = vmatpush1.bf16.msra.mxu1 %v3262_v11  ;;  %2657 = vmatpush1.bf16.msra.mxu0 %v2656_v38  ;;  %v1780_v11 = vld [vmem:[#allocation7 + $0x188] sm:$0xff]  ;;  %v1977_v38 = vld [vmem:[#allocation9 + $0x30] sm:$0xff] }
 0x65b   :  { %2691 = vmatprep.subr.bf16.mxu1 %v3268_v8  ;;  %2659 = vmatprep.subr.bf16.mxu0 %v2658_v50  ;;  %v1784_v8 = vld [vmem:[#allocation7 + $0x1a8] sm:$0xff]  ;;  %v2714_v49 = vpack.c.bf16 %v1978_v39, %v1977_v38  ;;  %v1979_v50 = vld [vmem:[#allocation9 + $0x40] sm:$0xff] }
 0x65c   :  { %v2718_v58 = vpack.c.bf16 %v1980_v51, %v1979_v50 }
 0x65e   :  { %2693 = vmatpush1.bf16.msra.mxu1 %v3270_v57  ;;  %2661 = vmatpush1.bf16.msra.mxu0 %v2660_v1  ;;  %v2662_v57 = vpack.c.bf16 %v1784_v8, %v1780_v11  ;;  %v1981_v1 = vld [vmem:[#allocation9 + $0x50] sm:$0xff]  ;;  %v1982_v11 = vld [vmem:[#allocation9 + $0x58] sm:$0xff] }
 0x65f   :  { %2695 = vmatprep.subr.bf16.mxu1 %v3276_v17  ;;  %v1779_v17 = vld [vmem:[#allocation7 + $0x180] sm:$0xff]  ;;  %v2722_v8 = vpack.c.bf16 %v1982_v11, %v1981_v1 }
 0x660   :  { %2663 = vmatprep.subr.bf16.mxu0 %v2662_v57  ;;  %v1983_v57 = vld [vmem:[#allocation9 + $0x60] sm:$0xff] }
 0x662   :  { %2697 = vmatpush1.bf16.msra.mxu1 %v3278_v43  ;;  %v1783_v43 = vld [vmem:[#allocation7 + $0x1a0] sm:$0xff] }
 0x663   :  { %2699 = vmatprep.subr.bf16.mxu1 %v3284_v31  ;;  %v2664_v31 = vpack.c.bf16 %v1783_v43, %v1779_v17  ;;  %v1984_v17 = vld [vmem:[#allocation9 + $0x68] sm:$0xff]  ;;  %v1985_v43 = vld [vmem:[#allocation9 + $0x70] sm:$0xff] }
 0x665   :  { %2665 = vmatpush1.bf16.msra.mxu0 %v2664_v31  ;;  %v1986_v31 = vld [vmem:[#allocation9 + $0x78] sm:$0xff] }
 0x666   :  { %2701 = vmatpush1.bf16.msra.mxu1 %v3286_v41  ;;  %v1788_v41 = vld [vmem:[#allocation7 + $0x1c8] sm:$0xff] }
 0x667   :  { %v2666_v40 = vpack.c.bf16 %v1792_v37, %v1788_v41  ;;  %v2730_v41 = vpack.c.bf16 %v1986_v31, %v1985_v43  ;;  %v1727_v37 = vld [vmem:[#allocation5 + $0xe0] sm:$0xff] }
 0x669   :  { %2667 = vmatprep.subr.bf16.mxu0 %v2666_v40  ;;  %v1728_v40 = vld [vmem:[#allocation5 + $0xe8] sm:$0xff] }
 0x66a   :  { %2669 = vmatpush1.bf16.msra.mxu0 %v2668_v60 }
 0x66b   :  { %2703 = vmatprep.subr.bf16.mxu0 %v2702_v14 }
 0x71c   :  { %v1624_v7 = vpop.f32.mrb[10].mxu0  ;;  %v1695_v24 = vpop.f32.mrb[14].mxu1 }
 0x71d   :  { %v1700_v35 = vadd.f32 %v1624_v7, %v1490_v21  ;;  %v1626_v48 = vpop.f32.mrb[11].mxu0  ;;  %v1697_v29 = vpop.f32.mrb[15].mxu1  ;;  %v1702_v30 = vadd.f32 %v1695_v24, %v1492_v52 }
 0x71e   :  { %v1701_v23 = vadd.f32 %v1626_v48, %v1491_v62  ;;  %v1703_v13 = vadd.f32 %v1697_v29, %v1493_v4 }
 0x71f   :  { %v1704_v53 = vmul.f32 0.5, %v1700_v35 }
 0x720   :  { %v1708_v54 = vmul.f32 0.5, %v1701_v23  ;;  %v1713_v55 = vmul.f32 0.5, %v1703_v13 }
 0x721   :  { %2802 = vtanh.f32 %v1704_v53 }
 0x722   :  { %2804 = vtanh.f32 %v1708_v54 }
 0x723   :  { %2806 = vtanh.f32 %v1702_v30 }
 0x724   :  { %2808 = vtanh.f32 %v1713_v55  ;;  %v2121_v55 = vld [vmem:[%s3457_s3] ss:$0 sm:$0xff] }
 0x72b   :  { %v2803_v20 = vpop.eup %2802 }
 0x72c   :  { %v2805_v59 = vpop.eup %2804  ;;  %v1706_v61 = vadd.f32 1.0, %v2803_v20 }
 0x72d   :  { %v1710_v2 = vadd.f32 1.0, %v2805_v59  ;;  %v2807_v5 = vpop.eup %2806 }
 0x72e   :  { %v1707_v3 = vmul.f32 0.5, %v1706_v61  ;;  %v2809_v25 = vpop.eup %2808 }
 0x72f   :  { %v1711_v12 = vmul.f32 0.5, %v1710_v2  ;;  %v1715_v42 = vadd.f32 1.0, %v2809_v25 }
 0x730   :  { %v1718_v9 = vmul.f32 %v2807_v5, %v1707_v3 }
 0x731   :  { %v1717_v63 = vmul.f32 %v1711_v12, %v3378_v15  ;;  %v1716_v6 = vmul.f32 0.5, %v1715_v42  ;;  %v2710_v15 = vpack.c.bf16 %v1976_v26, %v1975_v36 }
 0x733   :  { %v3409_v16 = vadd.f32 %v1718_v9, %v1717_v63 }
 0x735   :  { %2810 = vtanh.f32 %v3409_v16 }
 0x73f   :  { %v2811_v34 = vpop.eup %2810 }
 0x740   :  { %v1721_v22 = vmul.f32 %v2811_v34, %v1716_v6 }
 0x742   :  { %1860 = vmatmul.mubr.f32.vlgmr.msra.gmra.mrb[12].mxu0 %v1721_v22  ;;  %1931 = vmatmul.mubr.f32.vlgmr.msra.gmra.mrb[16].mxu1 %v1721_v22 }
 0x743   :  { %2705 = vmatpush3.bf16.msra.mxu0 %v2702_v14  ;;  %2178 = vmatprep.mubr.f32.mxu0 %v3107_v46  ;;  %v2726_v46 = vpack.c.bf16 %v1984_v17, %v1983_v57  ;;  %v1729_v14 = vld [vmem:[#allocation5 + $0xf0] sm:$0xff] }
 0x744   :  { %2707 = vmatprep.subr.bf16.mxu0 %v2706_v28 }
 0x747   :  { %2709 = vmatpush3.bf16.msra.mxu0 %v2706_v28 }
 0x748   :  { %2711 = vmatprep.subr.bf16.mxu0 %v2710_v15 }
 0x74b   :  { %2713 = vmatpush3.bf16.msra.mxu0 %v2710_v15 }
 0x74c   :  { %2715 = vmatprep.subr.bf16.mxu0 %v2714_v49 }
 0x74f   :  { %2717 = vmatpush3.bf16.msra.mxu0 %v2714_v49 }
 0x750   :  { %2719 = vmatprep.subr.bf16.mxu0 %v2718_v58 }
 0x753   :  { %2721 = vmatpush3.bf16.msra.mxu0 %v2718_v58 }
 0x754   :  { %2723 = vmatprep.subr.bf16.mxu0 %v2722_v8 }
 0x757   :  { %2725 = vmatpush3.bf16.msra.mxu0 %v2722_v8 }
 0x758   :  { %2727 = vmatprep.subr.bf16.mxu0 %v2726_v46 }
 0x75b   :  { %2729 = vmatpush3.bf16.msra.mxu0 %v2726_v46 }
 0x75c   :  { %2731 = vmatprep.subr.bf16.mxu0 %v2730_v41 }
 0x75f   :  { %2733 = vmatpush3.bf16.msra.mxu0 %v2730_v41 }
 0x762   :  { %2179 = vmatmul.mubr.f32.vlgmr.msra.gmra.mrb[14].mxu0 %v3149_v18 }
 0x763   :  { %2181 = vmatprep.mubr.f32.mxu0 %v3207_v10 }
 0x766   :  { %2182 = vmatmul.mubr.f32.gmra.mrb[16].mxu0 %v3297_v33  ;;  %v1730_v33 = vld [vmem:[#allocation5 + $0xf8] sm:$0xff] }
 0x767   :  { %2184 = vmatprep.mubr.f32.mxu0 %v3339_v45 }
 0x76a   :  { %2185 = vmatmul.mubr.f32.gmra.mrb[18].mxu0 %v3381_v19 }
 0x76b   :  { %2187 = vmatprep.mubr.f32.mxu0 %v1721_v22 }
 0x815   :  { %v1861_v27 = vpop.f32.mrb[12].mxu0  ;;  %v1932_v32 = vpop.f32.mrb[16].mxu1 }
 0x816   :  { %v1937_v60 = vadd.f32 %v1861_v27, %v1727_v37  ;;  %v1863_v44 = vpop.f32.mrb[13].mxu0  ;;  %v1934_v47 = vpop.f32.mrb[17].mxu1  ;;  %v1939_v10 = vadd.f32 %v1932_v32, %v1729_v14 }
 0x817   :  { %v1938_v21 = vadd.f32 %v1863_v44, %v1728_v40  ;;  %v1940_v45 = vadd.f32 %v1934_v47, %v1730_v33 }
 0x818   :  { %v1941_v62 = vmul.f32 0.5, %v1937_v60 }
 0x819   :  { %v1945_v18 = vmul.f32 0.5, %v1938_v21  ;;  %v1950_v7 = vmul.f32 0.5, %v1940_v45 }
 0x81a   :  { %2812 = vtanh.f32 %v1941_v62 }
 0x81b   :  { %2814 = vtanh.f32 %v1945_v18 }
 0x81c   :  { %2816 = vtanh.f32 %v1939_v10 }
 0x81d   :  { %2818 = vtanh.f32 %v1950_v7 }
 0x824   :  { %v2813_v19 = vpop.eup %2812 }
 0x825   :  { %v2815_v24 = vpop.eup %2814  ;;  %v1943_v35 = vadd.f32 1.0, %v2813_v19 }
 0x826   :  { %v1947_v48 = vadd.f32 1.0, %v2815_v24  ;;  %v2817_v52 = vpop.eup %2816 }
 0x827   :  { %v1944_v29 = vmul.f32 0.5, %v1943_v35  ;;  %v2819_v4 = vpop.eup %2818 }
 0x828   :  { %v1948_v23 = vmul.f32 0.5, %v1947_v48  ;;  %v1952_v13 = vadd.f32 1.0, %v2819_v4 }
 0x829   :  { %v1955_v53 = vmul.f32 %v2817_v52, %v1944_v29 }
 0x82a   :  { %v1954_v54 = vmul.f32 %v1948_v23, %v3409_v16  ;;  %v1953_v2 = vmul.f32 0.5, %v1952_v13 }
 0x82c   :  { %v1956_v30 = vadd.f32 %v1955_v53, %v1954_v54 }
 0x82e   :  { %2820 = vtanh.f32 %v1956_v30 }
 0x835   :  { %v2180_v20 = vpop.f32.mrb[14].mxu0 }
 0x836   :  { %v2066_v59 = vadd.f32 %v2180_v20, %v2121_v55  ;;  %v2060_v61 = vpop.f32.mrb[15].mxu0 }
 0x837   :  { %v2061_v3 = vadd.f32 %v2121_v55, %v2060_v61 }
 0x838   :  { %v2821_v5 = vpop.eup %2820  ;;  %2101 = vst.msk [vmem:[%s3458_s4 + $0x8] sm:$0xff] %vm2099_vm0, %v2066_v59 }
 0x839   :  { %2100 = vst.msk [vmem:[%s3458_s4] sm:$0xff] %vm2099_vm0, %v2061_v3  ;;  %v2183_v12 = vpop.f32.mrb[16].mxu0  ;;  %v1958_v9 = vmul.f32 %v2821_v5, %v1953_v2 }
 0x83a   :  { %v2076_v63 = vadd.f32 %v2183_v12, %v2121_v55  ;;  %v2070_v16 = vpop.f32.mrb[17].mxu0 }
 0x83b   :  { %v2071_v25 = vadd.f32 %v2121_v55, %v2070_v16  ;;  %2188 = vmatmul.mubr.f32.gmra.mrb[20].mxu0 %v1958_v9 }
 0x83c   :  { %2103 = vst.msk [vmem:[%s3458_s4 + $0x18] sm:$0xff] %vm2099_vm0, %v2076_v63 }
 0x83d   :  { %2102 = vst.msk [vmem:[%s3458_s4 + $0x10] sm:$0xff] %vm2099_vm0, %v2071_v25  ;;  %v2186_v42 = vpop.f32.mrb[18].mxu0 }
 0x83e   :  { %v2086_v0 = vadd.f32 %v2186_v42, %v2121_v55  ;;  %v2080_v56 = vpop.f32.mrb[19].mxu0 }
 0x83f   :  { %v2081_v6 = vadd.f32 %v2121_v55, %v2080_v56 }
 0x840   :  { %2105 = vst.msk [vmem:[%s3458_s4 + $0x28] sm:$0xff] %vm2099_vm0, %v2086_v0 }
 0x841   :  { %2104 = vst.msk [vmem:[%s3458_s4 + $0x20] sm:$0xff] %vm2099_vm0, %v2081_v6 }
 0x90e   :  { %v2189_v34 = vpop.f32.mrb[20].mxu0 }
 0x90f   :  { %v2096_v22 = vadd.f32 %v2189_v34, %v2121_v55  ;;  %v2090_v28 = vpop.f32.mrb[21].mxu0 }
 0x910   :  { %v2091_v36 = vadd.f32 %v2121_v55, %v2090_v28 }
 0x911   :  { %2107 = vst.msk [vmem:[%s3458_s4 + $0x38] sm:$0xff] %vm2099_vm0, %v2096_v22 }
 0x912   :  { %2106 = vst.msk [vmem:[%s3458_s4 + $0x30] sm:$0xff] %vm2099_vm0, %v2091_v36 }
 0x913   :  { %2112 = vsyncpa [#allocation6], 1 }
 0x914   :  { %2113 = vsyncpa [#allocation8], 1 }

</bundles_post_ra>
